<compile_context>
chip_gen: v6e
topology: v6e:2x2x1
jax: 0.10.0
libtpu: 0.0.40
codegen_flags: <defaults>
</compile_context>

<pallas_src>
import numpy as np
import jax
import jax.numpy as jnp
from jax.experimental import pallas as pl
from jax.experimental.pallas import tpu as pltpu

KDIM = 3                       # SplineConv dim=3
KSIZE = 25                     # kernel_size=25 per spline dimension
KTOT = KSIZE ** KDIM           # 15625 kernel weight matrices per layer
BN_EPS = 1e-5
CPAD = 32                      # uniform (padded) channel width inside the kernel

# channel plan of the 12 SplineConv layers of Net()
CHANNELS = [(2, 8), (8, 16), (16, 32), (32, 32), (32, 32), (32, 32),
            (32, 32), (32, 32), (32, 32), (32, 16), (16, 8), (8, 1)]
NUM_LAYERS = len(CHANNELS)


# ----------------------------------------------------------------------------
# Pallas kernel: grid = (layer, degree-slab), both sequential ("arbitrary").
# Refs:  src_ref  (1, 1, NPAD) int32   src node id per slot of this degree slab
#        x0_ref   (C, NPAD)    f32     initial node features (constant block)
#        weff_ref (1, C, C, NPAD) bf16 basis-folded spline weights of this slab
#        par_ref  (1, C, C+8)  f32     [root^T | bias | bn_scale | bn_shift | pad]
#        o_ref    (C, NPAD)    f32     resident h (constant output block)
#        agg_ref  (C, NPAD)    f32     per-layer aggregation scratch
# ----------------------------------------------------------------------------
def _net_kernel(src_ref, x0_ref, weff_ref, par_ref, o_ref, agg_ref):
    layer = pl.program_id(0)
    d = pl.program_id(1)
    cpad = o_ref.shape[0]
    npad = o_ref.shape[1]

    @pl.when(jnp.logical_and(layer == 0, d == 0))
    def _():
        o_ref[...] = x0_ref[...]                 # load initial features once

    # resident features of the previous layer; bf16 only as MXU operand.
    h_bf = o_ref[...].astype(jnp.bfloat16)       # (C, NPAD)

    # ---- gather x_src[:, n] = h[:, src_d[n]] --------------------------------
    # one-hot built in-kernel from the streamed int32 src ids (no HBM/VMEM
    # resident E x N operator); bf16 MXU matmul, f32 accumulation.
    src = src_ref[0]                             # (1, NPAD) int32
    eq = jax.lax.broadcasted_iota(jnp.int32, (npad, npad), 0) == src
    onehot = jnp.where(eq, 1.0, 0.0).astype(jnp.bfloat16)       # (NPAD, NPAD)
    x_src = jnp.dot(h_bf, onehot, preferred_element_type=jnp.float32)  # (C,NPAD)

    # ---- per-slot matvec: msg[o, n] = sum_i x_src[i, n] * W_eff[i, o, n] ----
    # unrolled lane-dense VPU FMAs; (1, NPAD) operands broadcast over sublanes
    # (cheap); weights stay bf16 in VMEM, accumulation in f32 (v5e-safe).
    msg = x_src[0:1, :] * weff_ref[0, 0]
    for ci in range(1, cpad):
        msg = msg + x_src[ci:ci + 1, :] * weff_ref[0, ci]        # (C, NPAD) f32

    # ---- aggregation across degree slabs (scatter-free, aggr='add') --------
    @pl.when(d == 0)
    def _():
        root_t = par_ref[0, :, 0:cpad].astype(jnp.bfloat16)      # (Cout, Cin)
        agg_ref[...] = jnp.dot(root_t, h_bf,
                               preferred_element_type=jnp.float32)

    agg_ref[...] += msg

    # ---- finalize layer: bias, ELU, folded eval BatchNorm -------------------
    @pl.when(d == pl.num_programs(1) - 1)
    def _():
        bias = par_ref[0, :, cpad:cpad + 1]                      # (C, 1)
        scale = par_ref[0, :, cpad + 1:cpad + 2]
        shift = par_ref[0, :, cpad + 2:cpad + 3]
        acc = agg_ref[...] + bias
        act = jnp.where(acc > 0.0, acc, jnp.exp(acc) - 1.0)      # ELU(alpha=1)
        o_ref[...] = act * scale + shift      # scale=1/shift=0 on last layer


def net_pallas(src_slots, x0, weff_all, par_all, *, dmax):
    cpad, npad = x0.shape
    num_layers = weff_all.shape[0]
    grid_spec = pltpu.PrefetchScalarGridSpec(
        num_scalar_prefetch=0,
        grid=(num_layers, dmax),
        in_specs=[
            pl.BlockSpec((1, 1, npad), lambda l, d: (d, 0, 0)),        # src ids
            pl.BlockSpec((cpad, npad), lambda l, d: (0, 0)),           # x0
            pl.BlockSpec((1, cpad, cpad, npad),
                         lambda l, d: (l, 0, 0, d)),                   # W_eff slab
            pl.BlockSpec((1, cpad, cpad + 8), lambda l, d: (l, 0, 0)), # packed params
        ],
        out_specs=pl.BlockSpec((cpad, npad), lambda l, d: (0, 0)),     # resident h
        scratch_shapes=[pltpu.VMEM((cpad, npad), jnp.float32)],        # agg
    )
    return pl.pallas_call(
        _net_kernel,
        out_shape=jax.ShapeDtypeStruct((cpad, npad), jnp.float32),
        grid_spec=grid_spec,
        compiler_params=pltpu.CompilerParams(
            dimension_semantics=("arbitrary", "arbitrary"),
            vmem_limit_bytes=64 * 1024 * 1024),
    )(src_slots, x0, weff_all, par_all)


# ----------------------------------------------------------------------------
# Glue: degree-1 open B-spline basis (as in torch_spline_conv), params, packing
# ----------------------------------------------------------------------------
def spline_basis_deg1(pseudo, ksize):
    """Returns basis weights (E, 8) and flattened kernel indices (E, 8)."""
    _, d = pseudo.shape
    v = pseudo * (ksize - 1)          # open spline, pseudo assumed in [0, 1]
    lo = jnp.floor(v)
    frac = v - lo
    lo = lo.astype(jnp.int32)
    strides = ksize ** jnp.arange(d, dtype=jnp.int32)   # dim 0 least significant
    bs, ks = [], []
    for s in range(2 ** d):
        bits = jnp.array([(s >> dd) & 1 for dd in range(d)], dtype=jnp.int32)
        w = jnp.prod(jnp.where(bits[None, :] == 1, frac, 1.0 - frac), axis=1)
        idx = jnp.sum(jnp.clip(lo + bits[None, :], 0, ksize - 1)
                      * strides[None, :], axis=1)
        bs.append(w)
        ks.append(idx)
    return jnp.stack(bs, axis=1), jnp.stack(ks, axis=1)


def init_params(key):
    params = []
    for l, (fin, fout) in enumerate(CHANNELS):
        k = jax.random.fold_in(key, l)
        kw, kr, kb = jax.random.split(k, 3)
        params.append(dict(
            weight=jax.random.normal(kw, (KTOT, fin, fout), jnp.float32) * 0.1,
            root=jax.random.normal(kr, (fin, fout), jnp.float32) * 0.1,
            bias=jax.random.normal(kb, (1, fout), jnp.float32) * 0.1,
            # BatchNorm1d default init / running stats (eval mode)
            gamma=jnp.ones((1, fout), jnp.float32),
            beta=jnp.zeros((1, fout), jnp.float32),
            mean=jnp.zeros((1, fout), jnp.float32),
            var=jnp.ones((1, fout), jnp.float32),
        ))
    return params


def net_forward(params, x, edge_index, pseudo, *, max_degree):
    n, fin0 = x.shape
    e = edge_index.shape[1]
    npad = ((n + 127) // 128) * 128                  # node axis lane-padded
    dmax = int(max_degree)                           # static

    # PyG MessagePassing convention: x_j = x[edge_index[0]] (source),
    # aggregated at edge_index[1] (target).  norm=False -> sum aggregation.
    src = edge_index[0]
    dst = edge_index[1]

    basis, kidx = spline_basis_deg1(pseudo, KSIZE)   # (E, 8), (E, 8)

    # dst-sorted, fixed-degree slot packing: slot(edge) = pos_within_dst*NPAD+dst
    order = jnp.argsort(dst)
    dst_s = dst[order].astype(jnp.int32)
    src_s = src[order].astype(jnp.int32)
    first = jnp.searchsorted(dst_s, dst_s, side="left").astype(jnp.int32)
    pos = jnp.arange(e, dtype=jnp.int32) - first     # position within dst segment
    slot = pos * npad + dst_s                        # requires pos < max_degree
    nslot = dmax * npad
    slot_edge = jnp.full((nslot,), -1, jnp.int32).at[slot].set(
        order.astype(jnp.int32))
    slot_src = jnp.zeros((nslot,), jnp.int32).at[slot].set(src_s)
    slot_valid = slot_edge >= 0
    e_clip = jnp.clip(slot_edge, 0, e - 1)
    src_slots = slot_src.reshape(dmax, 1, npad)      # (Dmax, 1, NPAD) int32

    weffs, pars = [], []
    for li, (fi, fo) in enumerate(CHANNELS):
        p = params[li]
        # fold the 8 B-spline basis contributions into one effective weight per
        # edge BEFORE anything reaches the kernel.
        # TODO(synk): cache per-graph (kidx/basis are static per mesh) so this
        # XLA-side weight gather is not re-materialized every forward call.
        wg = p["weight"][kidx]                               # (E, 8, fi, fo)
        weff_e = jnp.einsum("es,esio->eio", basis, wg)       # (E, fi, fo)
        w_slot = weff_e[e_clip] * slot_valid[:, None, None].astype(jnp.float32)
        w_slot = jnp.transpose(w_slot, (1, 2, 0))            # (fi, fo, S)
        w_slot = jnp.pad(w_slot, ((0, CPAD - fi), (0, CPAD - fo), (0, 0)))
        weffs.append(w_slot.astype(jnp.bfloat16))            # bf16 streaming

        # packed per-layer params: [:, :32] = root^T, 32 = bias, 33 = scale,
        # 34 = shift (eval-BN folded), 35.. = pad.
        root_t = jnp.pad(p["root"].T, ((0, CPAD - fo), (0, CPAD - fi)))
        bias = jnp.pad(p["bias"].reshape(-1), (0, CPAD - fo))
        if li < NUM_LAYERS - 1:
            sc = p["gamma"].reshape(-1) * jax.lax.rsqrt(p["var"].reshape(-1)
                                                        + BN_EPS)
            sh = p["beta"].reshape(-1) - p["mean"].reshape(-1) * sc
        else:                                                # last layer: no BN
            sc = jnp.ones((fo,), jnp.float32)
            sh = jnp.zeros((fo,), jnp.float32)
        sc = jnp.pad(sc, (0, CPAD - fo), constant_values=1.0)
        sh = jnp.pad(sh, (0, CPAD - fo))
        par = jnp.concatenate(
            [root_t, bias[:, None], sc[:, None], sh[:, None],
             jnp.zeros((CPAD, 5), jnp.float32)], axis=1)     # (32, 40)
        pars.append(par)

    weff_all = jnp.stack(weffs)                      # (L, 32, 32, Dmax*NPAD) bf16
    par_all = jnp.stack(pars)                        # (L, 32, 40) f32
    x0 = jnp.pad(x.T, ((0, CPAD - fin0), (0, npad - n)))      # (32, NPAD)

    out = net_pallas(src_slots, x0, weff_all, par_all, dmax=dmax)  # (32, NPAD)
    # F.dropout(p=0.1) is identity in inference mode (no-op).
    return out[0, :n]                                # .view(-1)


# ----------------------------------------------------------------------------
if __name__ == "__main__":
    key = jax.random.PRNGKey(0)
    n_nodes, n_edges = 32, 64
    kx, ke, kp, kparams = jax.random.split(key, 4)

    x = jax.random.normal(kx, (n_nodes, 2), jnp.float32)             # data.x
    edge_index = jax.random.randint(ke, (2, n_edges), 0, n_nodes,
                                    dtype=jnp.int32)                 # data.edge_index
    pseudo = jax.random.uniform(kp, (n_edges, KDIM), jnp.float32,
                                0.0, 1.0)                            # data.edge_attr

    params = init_params(kparams)

    # static max in-degree (fixed per mesh in the real application)
    max_degree = max(1, int(np.bincount(np.asarray(edge_index[1]),
                                        minlength=n_nodes).max()))

    fwd = jax.jit(net_forward, static_argnames=("max_degree",))
    out = fwd(params, x, edge_index, pseudo, max_degree=max_degree)
    jax.block_until_ready(out)

    assert out.shape == (n_nodes,)
    assert bool(jnp.all(jnp.isfinite(out)))
    print("KERNEL_OK")
</pallas_src>

<mosaic_0001>
module attributes {stable_mosaic.version = 11 : i64} {
  func.func @_net_kernel(%arg0: i32, %arg1: i32, %arg2: memref<1x1x128xi32, #tpu.memory_space<vmem>>, %arg3: memref<32x128xf32, #tpu.memory_space<vmem>>, %arg4: memref<1x32x32x128xbf16, #tpu.memory_space<vmem>>, %arg5: memref<1x32x40xf32, #tpu.memory_space<vmem>>, %arg6: memref<32x128xf32, #tpu.memory_space<vmem>>, %arg7: memref<32x128xf32, #tpu.memory_space<vmem>>) attributes {dimension_semantics = [#tpu.dimension_semantics<arbitrary>, #tpu.dimension_semantics<arbitrary>], iteration_bounds = array<i64: 12, 5>, scalar_prefetch = 0 : i64, scratch_operands = 1 : i64, tpu.core_type = #tpu.core_type<tc>, window_params = [{transform_indices = @transform_0, window_bounds = array<i64: 1, 1, 128>}, {pipeline_mode = #tpu.pipeline_mode<synchronous>, transform_indices = @transform_1, window_bounds = array<i64: 32, 128>}, {transform_indices = @transform_2, window_bounds = array<i64: 1, 32, 32, 128>}, {transform_indices = @transform_3, window_bounds = array<i64: 1, 32, 40>}, {pipeline_mode = #tpu.pipeline_mode<synchronous>, transform_indices = @transform_4, window_bounds = array<i64: 32, 128>}]} {
    %c0_i32 = arith.constant 0 : i32
    %0 = arith.cmpi eq, %arg0, %c0_i32 : i32
    %c0_i32_0 = arith.constant 0 : i32
    %1 = arith.cmpi eq, %arg1, %c0_i32_0 : i32
    %2 = arith.andi %0, %1 : i1
    %3 = arith.extui %2 : i1 to i32
    %c0_i32_1 = arith.constant 0 : i32
    %4 = arith.cmpi ne, %3, %c0_i32_1 : i32
    scf.if %4 {
      %c0_112 = arith.constant 0 : index
      %c0_113 = arith.constant 0 : index
      %249 = vector.load %arg3[%c0_112, %c0_113] : memref<32x128xf32, #tpu.memory_space<vmem>>, vector<32x128xf32>
      %c0_114 = arith.constant 0 : index
      %c0_115 = arith.constant 0 : index
      %250 = vector.load %arg6[%c0_114, %c0_115] : memref<32x128xf32, #tpu.memory_space<vmem>>, vector<32x128xf32>
      tpu.vector_store %arg6[%c0_114, %c0_115], %249 {strides = array<i32>} : memref<32x128xf32, #tpu.memory_space<vmem>>, vector<32x128xf32>,
    } else {
    }
    %c0 = arith.constant 0 : index
    %c0_2 = arith.constant 0 : index
    %5 = vector.load %arg6[%c0, %c0_2] : memref<32x128xf32, #tpu.memory_space<vmem>>, vector<32x128xf32>
    %6 = arith.truncf %5 : vector<32x128xf32> to vector<32x128xbf16>
    %c0_3 = arith.constant 0 : index
    %c0_4 = arith.constant 0 : index
    %c0_5 = arith.constant 0 : index
    %7 = vector.load %arg2[%c0_3, %c0_4, %c0_5] : memref<1x1x128xi32, #tpu.memory_space<vmem>>, vector<1x1x128xi32>
    %8 = vector.shape_cast %7 : vector<1x1x128xi32> to vector<1x128xi32>
    %9 = tpu.iota {dimensions = array<i32: 0>} : vector<128x128xi32>
    %10 = vector.broadcast %8 : vector<1x128xi32> to vector<128x128xi32>
    %11 = arith.cmpi eq, %9, %10 : vector<128x128xi32>
    %cst = arith.constant 1.000000e+00 : f32
    %cst_6 = arith.constant 0.000000e+00 : f32
    %12 = vector.broadcast %cst : f32 to vector<128x128xf32>
    %13 = vector.broadcast %cst_6 : f32 to vector<128x128xf32>
    %14 = arith.select %11, %12, %13 : vector<128x128xi1>, vector<128x128xf32>
    %15 = arith.truncf %14 : vector<128x128xf32> to vector<128x128xbf16>
    %cst_7 = arith.constant dense<0.000000e+00> : vector<32x128xf32>
    %16 = tpu.matmul %6, %15, %cst_7 {dimension_numbers = #tpu.dot_dimension_numbers<[1], [0], [0], [1], [0, 0, 1, 1], [], []>} : vector<32x128xbf16>, vector<128x128xbf16>, vector<32x128xf32> -> vector<32x128xf32>
    %17 = vector.extract_strided_slice %16 {offsets = [0, 0], sizes = [1, 128], strides = [1, 1]} : vector<32x128xf32> to vector<1x128xf32>
    %c0_8 = arith.constant 0 : index
    %c0_9 = arith.constant 0 : index
    %c0_10 = arith.constant 0 : index
    %c0_11 = arith.constant 0 : index
    %18 = vector.load %arg4[%c0_8, %c0_9, %c0_10, %c0_11] : memref<1x32x32x128xbf16, #tpu.memory_space<vmem>>, vector<1x1x32x128xbf16>
    %19 = vector.shape_cast %18 : vector<1x1x32x128xbf16> to vector<32x128xbf16>
    %20 = arith.extf %19 : vector<32x128xbf16> to vector<32x128xf32>
    %21 = vector.broadcast %17 : vector<1x128xf32> to vector<32x128xf32>
    %22 = arith.mulf %21, %20 : vector<32x128xf32>
    %23 = vector.extract_strided_slice %16 {offsets = [1, 0], sizes = [1, 128], strides = [1, 1]} : vector<32x128xf32> to vector<1x128xf32>
    %c0_12 = arith.constant 0 : index
    %c1 = arith.constant 1 : index
    %c0_13 = arith.constant 0 : index
    %c0_14 = arith.constant 0 : index
    %24 = vector.load %arg4[%c0_12, %c1, %c0_13, %c0_14] : memref<1x32x32x128xbf16, #tpu.memory_space<vmem>>, vector<1x1x32x128xbf16>
    %25 = vector.shape_cast %24 : vector<1x1x32x128xbf16> to vector<32x128xbf16>
    %26 = arith.extf %25 : vector<32x128xbf16> to vector<32x128xf32>
    %27 = vector.broadcast %23 : vector<1x128xf32> to vector<32x128xf32>
    %28 = arith.mulf %27, %26 : vector<32x128xf32>
    %29 = arith.addf %22, %28 : vector<32x128xf32>
    %30 = vector.extract_strided_slice %16 {offsets = [2, 0], sizes = [1, 128], strides = [1, 1]} : vector<32x128xf32> to vector<1x128xf32>
    %c0_15 = arith.constant 0 : index
    %c2 = arith.constant 2 : index
    %c0_16 = arith.constant 0 : index
    %c0_17 = arith.constant 0 : index
    %31 = vector.load %arg4[%c0_15, %c2, %c0_16, %c0_17] : memref<1x32x32x128xbf16, #tpu.memory_space<vmem>>, vector<1x1x32x128xbf16>
    %32 = vector.shape_cast %31 : vector<1x1x32x128xbf16> to vector<32x128xbf16>
    %33 = arith.extf %32 : vector<32x128xbf16> to vector<32x128xf32>
    %34 = vector.broadcast %30 : vector<1x128xf32> to vector<32x128xf32>
    %35 = arith.mulf %34, %33 : vector<32x128xf32>
    %36 = arith.addf %29, %35 : vector<32x128xf32>
    %37 = vector.extract_strided_slice %16 {offsets = [3, 0], sizes = [1, 128], strides = [1, 1]} : vector<32x128xf32> to vector<1x128xf32>
    %c0_18 = arith.constant 0 : index
    %c3 = arith.constant 3 : index
    %c0_19 = arith.constant 0 : index
    %c0_20 = arith.constant 0 : index
    %38 = vector.load %arg4[%c0_18, %c3, %c0_19, %c0_20] : memref<1x32x32x128xbf16, #tpu.memory_space<vmem>>, vector<1x1x32x128xbf16>
    %39 = vector.shape_cast %38 : vector<1x1x32x128xbf16> to vector<32x128xbf16>
    %40 = arith.extf %39 : vector<32x128xbf16> to vector<32x128xf32>
    %41 = vector.broadcast %37 : vector<1x128xf32> to vector<32x128xf32>
    %42 = arith.mulf %41, %40 : vector<32x128xf32>
    %43 = arith.addf %36, %42 : vector<32x128xf32>
    %44 = vector.extract_strided_slice %16 {offsets = [4, 0], sizes = [1, 128], strides = [1, 1]} : vector<32x128xf32> to vector<1x128xf32>
    %c0_21 = arith.constant 0 : index
    %c4 = arith.constant 4 : index
    %c0_22 = arith.constant 0 : index
    %c0_23 = arith.constant 0 : index
    %45 = vector.load %arg4[%c0_21, %c4, %c0_22, %c0_23] : memref<1x32x32x128xbf16, #tpu.memory_space<vmem>>, vector<1x1x32x128xbf16>
    %46 = vector.shape_cast %45 : vector<1x1x32x128xbf16> to vector<32x128xbf16>
    %47 = arith.extf %46 : vector<32x128xbf16> to vector<32x128xf32>
    %48 = vector.broadcast %44 : vector<1x128xf32> to vector<32x128xf32>
    %49 = arith.mulf %48, %47 : vector<32x128xf32>
    %50 = arith.addf %43, %49 : vector<32x128xf32>
    %51 = vector.extract_strided_slice %16 {offsets = [5, 0], sizes = [1, 128], strides = [1, 1]} : vector<32x128xf32> to vector<1x128xf32>
    %c0_24 = arith.constant 0 : index
    %c5 = arith.constant 5 : index
    %c0_25 = arith.constant 0 : index
    %c0_26 = arith.constant 0 : index
    %52 = vector.load %arg4[%c0_24, %c5, %c0_25, %c0_26] : memref<1x32x32x128xbf16, #tpu.memory_space<vmem>>, vector<1x1x32x128xbf16>
    %53 = vector.shape_cast %52 : vector<1x1x32x128xbf16> to vector<32x128xbf16>
    %54 = arith.extf %53 : vector<32x128xbf16> to vector<32x128xf32>
    %55 = vector.broadcast %51 : vector<1x128xf32> to vector<32x128xf32>
    %56 = arith.mulf %55, %54 : vector<32x128xf32>
    %57 = arith.addf %50, %56 : vector<32x128xf32>
    %58 = vector.extract_strided_slice %16 {offsets = [6, 0], sizes = [1, 128], strides = [1, 1]} : vector<32x128xf32> to vector<1x128xf32>
    %c0_27 = arith.constant 0 : index
    %c6 = arith.constant 6 : index
    %c0_28 = arith.constant 0 : index
    %c0_29 = arith.constant 0 : index
    %59 = vector.load %arg4[%c0_27, %c6, %c0_28, %c0_29] : memref<1x32x32x128xbf16, #tpu.memory_space<vmem>>, vector<1x1x32x128xbf16>
    %60 = vector.shape_cast %59 : vector<1x1x32x128xbf16> to vector<32x128xbf16>
    %61 = arith.extf %60 : vector<32x128xbf16> to vector<32x128xf32>
    %62 = vector.broadcast %58 : vector<1x128xf32> to vector<32x128xf32>
    %63 = arith.mulf %62, %61 : vector<32x128xf32>
    %64 = arith.addf %57, %63 : vector<32x128xf32>
    %65 = vector.extract_strided_slice %16 {offsets = [7, 0], sizes = [1, 128], strides = [1, 1]} : vector<32x128xf32> to vector<1x128xf32>
    %c0_30 = arith.constant 0 : index
    %c7 = arith.constant 7 : index
    %c0_31 = arith.constant 0 : index
    %c0_32 = arith.constant 0 : index
    %66 = vector.load %arg4[%c0_30, %c7, %c0_31, %c0_32] : memref<1x32x32x128xbf16, #tpu.memory_space<vmem>>, vector<1x1x32x128xbf16>
    %67 = vector.shape_cast %66 : vector<1x1x32x128xbf16> to vector<32x128xbf16>
    %68 = arith.extf %67 : vector<32x128xbf16> to vector<32x128xf32>
    %69 = vector.broadcast %65 : vector<1x128xf32> to vector<32x128xf32>
    %70 = arith.mulf %69, %68 : vector<32x128xf32>
    %71 = arith.addf %64, %70 : vector<32x128xf32>
    %72 = vector.extract_strided_slice %16 {offsets = [8, 0], sizes = [1, 128], strides = [1, 1]} : vector<32x128xf32> to vector<1x128xf32>
    %c0_33 = arith.constant 0 : index
    %c8 = arith.constant 8 : index
    %c0_34 = arith.constant 0 : index
    %c0_35 = arith.constant 0 : index
    %73 = vector.load %arg4[%c0_33, %c8, %c0_34, %c0_35] : memref<1x32x32x128xbf16, #tpu.memory_space<vmem>>, vector<1x1x32x128xbf16>
    %74 = vector.shape_cast %73 : vector<1x1x32x128xbf16> to vector<32x128xbf16>
    %75 = arith.extf %74 : vector<32x128xbf16> to vector<32x128xf32>
    %76 = vector.broadcast %72 : vector<1x128xf32> to vector<32x128xf32>
    %77 = arith.mulf %76, %75 : vector<32x128xf32>
    %78 = arith.addf %71, %77 : vector<32x128xf32>
    %79 = vector.extract_strided_slice %16 {offsets = [9, 0], sizes = [1, 128], strides = [1, 1]} : vector<32x128xf32> to vector<1x128xf32>
    %c0_36 = arith.constant 0 : index
    %c9 = arith.constant 9 : index
    %c0_37 = arith.constant 0 : index
    %c0_38 = arith.constant 0 : index
    %80 = vector.load %arg4[%c0_36, %c9, %c0_37, %c0_38] : memref<1x32x32x128xbf16, #tpu.memory_space<vmem>>, vector<1x1x32x128xbf16>
    %81 = vector.shape_cast %80 : vector<1x1x32x128xbf16> to vector<32x128xbf16>
    %82 = arith.extf %81 : vector<32x128xbf16> to vector<32x128xf32>
    %83 = vector.broadcast %79 : vector<1x128xf32> to vector<32x128xf32>
    %84 = arith.mulf %83, %82 : vector<32x128xf32>
    %85 = arith.addf %78, %84 : vector<32x128xf32>
    %86 = vector.extract_strided_slice %16 {offsets = [10, 0], sizes = [1, 128], strides = [1, 1]} : vector<32x128xf32> to vector<1x128xf32>
    %c0_39 = arith.constant 0 : index
    %c10 = arith.constant 10 : index
    %c0_40 = arith.constant 0 : index
    %c0_41 = arith.constant 0 : index
    %87 = vector.load %arg4[%c0_39, %c10, %c0_40, %c0_41] : memref<1x32x32x128xbf16, #tpu.memory_space<vmem>>, vector<1x1x32x128xbf16>
    %88 = vector.shape_cast %87 : vector<1x1x32x128xbf16> to vector<32x128xbf16>
    %89 = arith.extf %88 : vector<32x128xbf16> to vector<32x128xf32>
    %90 = vector.broadcast %86 : vector<1x128xf32> to vector<32x128xf32>
    %91 = arith.mulf %90, %89 : vector<32x128xf32>
    %92 = arith.addf %85, %91 : vector<32x128xf32>
    %93 = vector.extract_strided_slice %16 {offsets = [11, 0], sizes = [1, 128], strides = [1, 1]} : vector<32x128xf32> to vector<1x128xf32>
    %c0_42 = arith.constant 0 : index
    %c11 = arith.constant 11 : index
    %c0_43 = arith.constant 0 : index
    %c0_44 = arith.constant 0 : index
    %94 = vector.load %arg4[%c0_42, %c11, %c0_43, %c0_44] : memref<1x32x32x128xbf16, #tpu.memory_space<vmem>>, vector<1x1x32x128xbf16>
    %95 = vector.shape_cast %94 : vector<1x1x32x128xbf16> to vector<32x128xbf16>
    %96 = arith.extf %95 : vector<32x128xbf16> to vector<32x128xf32>
    %97 = vector.broadcast %93 : vector<1x128xf32> to vector<32x128xf32>
    %98 = arith.mulf %97, %96 : vector<32x128xf32>
    %99 = arith.addf %92, %98 : vector<32x128xf32>
    %100 = vector.extract_strided_slice %16 {offsets = [12, 0], sizes = [1, 128], strides = [1, 1]} : vector<32x128xf32> to vector<1x128xf32>
    %c0_45 = arith.constant 0 : index
    %c12 = arith.constant 12 : index
    %c0_46 = arith.constant 0 : index
    %c0_47 = arith.constant 0 : index
    %101 = vector.load %arg4[%c0_45, %c12, %c0_46, %c0_47] : memref<1x32x32x128xbf16, #tpu.memory_space<vmem>>, vector<1x1x32x128xbf16>
    %102 = vector.shape_cast %101 : vector<1x1x32x128xbf16> to vector<32x128xbf16>
    %103 = arith.extf %102 : vector<32x128xbf16> to vector<32x128xf32>
    %104 = vector.broadcast %100 : vector<1x128xf32> to vector<32x128xf32>
    %105 = arith.mulf %104, %103 : vector<32x128xf32>
    %106 = arith.addf %99, %105 : vector<32x128xf32>
    %107 = vector.extract_strided_slice %16 {offsets = [13, 0], sizes = [1, 128], strides = [1, 1]} : vector<32x128xf32> to vector<1x128xf32>
    %c0_48 = arith.constant 0 : index
    %c13 = arith.constant 13 : index
    %c0_49 = arith.constant 0 : index
    %c0_50 = arith.constant 0 : index
    %108 = vector.load %arg4[%c0_48, %c13, %c0_49, %c0_50] : memref<1x32x32x128xbf16, #tpu.memory_space<vmem>>, vector<1x1x32x128xbf16>
    %109 = vector.shape_cast %108 : vector<1x1x32x128xbf16> to vector<32x128xbf16>
    %110 = arith.extf %109 : vector<32x128xbf16> to vector<32x128xf32>
    %111 = vector.broadcast %107 : vector<1x128xf32> to vector<32x128xf32>
    %112 = arith.mulf %111, %110 : vector<32x128xf32>
    %113 = arith.addf %106, %112 : vector<32x128xf32>
    %114 = vector.extract_strided_slice %16 {offsets = [14, 0], sizes = [1, 128], strides = [1, 1]} : vector<32x128xf32> to vector<1x128xf32>
    %c0_51 = arith.constant 0 : index
    %c14 = arith.constant 14 : index
    %c0_52 = arith.constant 0 : index
    %c0_53 = arith.constant 0 : index
    %115 = vector.load %arg4[%c0_51, %c14, %c0_52, %c0_53] : memref<1x32x32x128xbf16, #tpu.memory_space<vmem>>, vector<1x1x32x128xbf16>
    %116 = vector.shape_cast %115 : vector<1x1x32x128xbf16> to vector<32x128xbf16>
    %117 = arith.extf %116 : vector<32x128xbf16> to vector<32x128xf32>
    %118 = vector.broadcast %114 : vector<1x128xf32> to vector<32x128xf32>
    %119 = arith.mulf %118, %117 : vector<32x128xf32>
    %120 = arith.addf %113, %119 : vector<32x128xf32>
    %121 = vector.extract_strided_slice %16 {offsets = [15, 0], sizes = [1, 128], strides = [1, 1]} : vector<32x128xf32> to vector<1x128xf32>
    %c0_54 = arith.constant 0 : index
    %c15 = arith.constant 15 : index
    %c0_55 = arith.constant 0 : index
    %c0_56 = arith.constant 0 : index
    %122 = vector.load %arg4[%c0_54, %c15, %c0_55, %c0_56] : memref<1x32x32x128xbf16, #tpu.memory_space<vmem>>, vector<1x1x32x128xbf16>
    %123 = vector.shape_cast %122 : vector<1x1x32x128xbf16> to vector<32x128xbf16>
    %124 = arith.extf %123 : vector<32x128xbf16> to vector<32x128xf32>
    %125 = vector.broadcast %121 : vector<1x128xf32> to vector<32x128xf32>
    %126 = arith.mulf %125, %124 : vector<32x128xf32>
    %127 = arith.addf %120, %126 : vector<32x128xf32>
    %128 = vector.extract_strided_slice %16 {offsets = [16, 0], sizes = [1, 128], strides = [1, 1]} : vector<32x128xf32> to vector<1x128xf32>
    %c0_57 = arith.constant 0 : index
    %c16 = arith.constant 16 : index
    %c0_58 = arith.constant 0 : index
    %c0_59 = arith.constant 0 : index
    %129 = vector.load %arg4[%c0_57, %c16, %c0_58, %c0_59] : memref<1x32x32x128xbf16, #tpu.memory_space<vmem>>, vector<1x1x32x128xbf16>
    %130 = vector.shape_cast %129 : vector<1x1x32x128xbf16> to vector<32x128xbf16>
    %131 = arith.extf %130 : vector<32x128xbf16> to vector<32x128xf32>
    %132 = vector.broadcast %128 : vector<1x128xf32> to vector<32x128xf32>
    %133 = arith.mulf %132, %131 : vector<32x128xf32>
    %134 = arith.addf %127, %133 : vector<32x128xf32>
    %135 = vector.extract_strided_slice %16 {offsets = [17, 0], sizes = [1, 128], strides = [1, 1]} : vector<32x128xf32> to vector<1x128xf32>
    %c0_60 = arith.constant 0 : index
    %c17 = arith.constant 17 : index
    %c0_61 = arith.constant 0 : index
    %c0_62 = arith.constant 0 : index
    %136 = vector.load %arg4[%c0_60, %c17, %c0_61, %c0_62] : memref<1x32x32x128xbf16, #tpu.memory_space<vmem>>, vector<1x1x32x128xbf16>
    %137 = vector.shape_cast %136 : vector<1x1x32x128xbf16> to vector<32x128xbf16>
    %138 = arith.extf %137 : vector<32x128xbf16> to vector<32x128xf32>
    %139 = vector.broadcast %135 : vector<1x128xf32> to vector<32x128xf32>
    %140 = arith.mulf %139, %138 : vector<32x128xf32>
    %141 = arith.addf %134, %140 : vector<32x128xf32>
    %142 = vector.extract_strided_slice %16 {offsets = [18, 0], sizes = [1, 128], strides = [1, 1]} : vector<32x128xf32> to vector<1x128xf32>
    %c0_63 = arith.constant 0 : index
    %c18 = arith.constant 18 : index
    %c0_64 = arith.constant 0 : index
    %c0_65 = arith.constant 0 : index
    %143 = vector.load %arg4[%c0_63, %c18, %c0_64, %c0_65] : memref<1x32x32x128xbf16, #tpu.memory_space<vmem>>, vector<1x1x32x128xbf16>
    %144 = vector.shape_cast %143 : vector<1x1x32x128xbf16> to vector<32x128xbf16>
    %145 = arith.extf %144 : vector<32x128xbf16> to vector<32x128xf32>
    %146 = vector.broadcast %142 : vector<1x128xf32> to vector<32x128xf32>
    %147 = arith.mulf %146, %145 : vector<32x128xf32>
    %148 = arith.addf %141, %147 : vector<32x128xf32>
    %149 = vector.extract_strided_slice %16 {offsets = [19, 0], sizes = [1, 128], strides = [1, 1]} : vector<32x128xf32> to vector<1x128xf32>
    %c0_66 = arith.constant 0 : index
    %c19 = arith.constant 19 : index
    %c0_67 = arith.constant 0 : index
    %c0_68 = arith.constant 0 : index
    %150 = vector.load %arg4[%c0_66, %c19, %c0_67, %c0_68] : memref<1x32x32x128xbf16, #tpu.memory_space<vmem>>, vector<1x1x32x128xbf16>
    %151 = vector.shape_cast %150 : vector<1x1x32x128xbf16> to vector<32x128xbf16>
    %152 = arith.extf %151 : vector<32x128xbf16> to vector<32x128xf32>
    %153 = vector.broadcast %149 : vector<1x128xf32> to vector<32x128xf32>
    %154 = arith.mulf %153, %152 : vector<32x128xf32>
    %155 = arith.addf %148, %154 : vector<32x128xf32>
    %156 = vector.extract_strided_slice %16 {offsets = [20, 0], sizes = [1, 128], strides = [1, 1]} : vector<32x128xf32> to vector<1x128xf32>
    %c0_69 = arith.constant 0 : index
    %c20 = arith.constant 20 : index
    %c0_70 = arith.constant 0 : index
    %c0_71 = arith.constant 0 : index
    %157 = vector.load %arg4[%c0_69, %c20, %c0_70, %c0_71] : memref<1x32x32x128xbf16, #tpu.memory_space<vmem>>, vector<1x1x32x128xbf16>
    %158 = vector.shape_cast %157 : vector<1x1x32x128xbf16> to vector<32x128xbf16>
    %159 = arith.extf %158 : vector<32x128xbf16> to vector<32x128xf32>
    %160 = vector.broadcast %156 : vector<1x128xf32> to vector<32x128xf32>
    %161 = arith.mulf %160, %159 : vector<32x128xf32>
    %162 = arith.addf %155, %161 : vector<32x128xf32>
    %163 = vector.extract_strided_slice %16 {offsets = [21, 0], sizes = [1, 128], strides = [1, 1]} : vector<32x128xf32> to vector<1x128xf32>
    %c0_72 = arith.constant 0 : index
    %c21 = arith.constant 21 : index
    %c0_73 = arith.constant 0 : index
    %c0_74 = arith.constant 0 : index
    %164 = vector.load %arg4[%c0_72, %c21, %c0_73, %c0_74] : memref<1x32x32x128xbf16, #tpu.memory_space<vmem>>, vector<1x1x32x128xbf16>
    %165 = vector.shape_cast %164 : vector<1x1x32x128xbf16> to vector<32x128xbf16>
    %166 = arith.extf %165 : vector<32x128xbf16> to vector<32x128xf32>
    %167 = vector.broadcast %163 : vector<1x128xf32> to vector<32x128xf32>
    %168 = arith.mulf %167, %166 : vector<32x128xf32>
    %169 = arith.addf %162, %168 : vector<32x128xf32>
    %170 = vector.extract_strided_slice %16 {offsets = [22, 0], sizes = [1, 128], strides = [1, 1]} : vector<32x128xf32> to vector<1x128xf32>
    %c0_75 = arith.constant 0 : index
    %c22 = arith.constant 22 : index
    %c0_76 = arith.constant 0 : index
    %c0_77 = arith.constant 0 : index
    %171 = vector.load %arg4[%c0_75, %c22, %c0_76, %c0_77] : memref<1x32x32x128xbf16, #tpu.memory_space<vmem>>, vector<1x1x32x128xbf16>
    %172 = vector.shape_cast %171 : vector<1x1x32x128xbf16> to vector<32x128xbf16>
    %173 = arith.extf %172 : vector<32x128xbf16> to vector<32x128xf32>
    %174 = vector.broadcast %170 : vector<1x128xf32> to vector<32x128xf32>
    %175 = arith.mulf %174, %173 : vector<32x128xf32>
    %176 = arith.addf %169, %175 : vector<32x128xf32>
    %177 = vector.extract_strided_slice %16 {offsets = [23, 0], sizes = [1, 128], strides = [1, 1]} : vector<32x128xf32> to vector<1x128xf32>
    %c0_78 = arith.constant 0 : index
    %c23 = arith.constant 23 : index
    %c0_79 = arith.constant 0 : index
    %c0_80 = arith.constant 0 : index
    %178 = vector.load %arg4[%c0_78, %c23, %c0_79, %c0_80] : memref<1x32x32x128xbf16, #tpu.memory_space<vmem>>, vector<1x1x32x128xbf16>
    %179 = vector.shape_cast %178 : vector<1x1x32x128xbf16> to vector<32x128xbf16>
    %180 = arith.extf %179 : vector<32x128xbf16> to vector<32x128xf32>
    %181 = vector.broadcast %177 : vector<1x128xf32> to vector<32x128xf32>
    %182 = arith.mulf %181, %180 : vector<32x128xf32>
    %183 = arith.addf %176, %182 : vector<32x128xf32>
    %184 = vector.extract_strided_slice %16 {offsets = [24, 0], sizes = [1, 128], strides = [1, 1]} : vector<32x128xf32> to vector<1x128xf32>
    %c0_81 = arith.constant 0 : index
    %c24 = arith.constant 24 : index
    %c0_82 = arith.constant 0 : index
    %c0_83 = arith.constant 0 : index
    %185 = vector.load %arg4[%c0_81, %c24, %c0_82, %c0_83] : memref<1x32x32x128xbf16, #tpu.memory_space<vmem>>, vector<1x1x32x128xbf16>
    %186 = vector.shape_cast %185 : vector<1x1x32x128xbf16> to vector<32x128xbf16>
    %187 = arith.extf %186 : vector<32x128xbf16> to vector<32x128xf32>
    %188 = vector.broadcast %184 : vector<1x128xf32> to vector<32x128xf32>
    %189 = arith.mulf %188, %187 : vector<32x128xf32>
    %190 = arith.addf %183, %189 : vector<32x128xf32>
    %191 = vector.extract_strided_slice %16 {offsets = [25, 0], sizes = [1, 128], strides = [1, 1]} : vector<32x128xf32> to vector<1x128xf32>
    %c0_84 = arith.constant 0 : index
    %c25 = arith.constant 25 : index
    %c0_85 = arith.constant 0 : index
    %c0_86 = arith.constant 0 : index
    %192 = vector.load %arg4[%c0_84, %c25, %c0_85, %c0_86] : memref<1x32x32x128xbf16, #tpu.memory_space<vmem>>, vector<1x1x32x128xbf16>
    %193 = vector.shape_cast %192 : vector<1x1x32x128xbf16> to vector<32x128xbf16>
    %194 = arith.extf %193 : vector<32x128xbf16> to vector<32x128xf32>
    %195 = vector.broadcast %191 : vector<1x128xf32> to vector<32x128xf32>
    %196 = arith.mulf %195, %194 : vector<32x128xf32>
    %197 = arith.addf %190, %196 : vector<32x128xf32>
    %198 = vector.extract_strided_slice %16 {offsets = [26, 0], sizes = [1, 128], strides = [1, 1]} : vector<32x128xf32> to vector<1x128xf32>
    %c0_87 = arith.constant 0 : index
    %c26 = arith.constant 26 : index
    %c0_88 = arith.constant 0 : index
    %c0_89 = arith.constant 0 : index
    %199 = vector.load %arg4[%c0_87, %c26, %c0_88, %c0_89] : memref<1x32x32x128xbf16, #tpu.memory_space<vmem>>, vector<1x1x32x128xbf16>
    %200 = vector.shape_cast %199 : vector<1x1x32x128xbf16> to vector<32x128xbf16>
    %201 = arith.extf %200 : vector<32x128xbf16> to vector<32x128xf32>
    %202 = vector.broadcast %198 : vector<1x128xf32> to vector<32x128xf32>
    %203 = arith.mulf %202, %201 : vector<32x128xf32>
    %204 = arith.addf %197, %203 : vector<32x128xf32>
    %205 = vector.extract_strided_slice %16 {offsets = [27, 0], sizes = [1, 128], strides = [1, 1]} : vector<32x128xf32> to vector<1x128xf32>
    %c0_90 = arith.constant 0 : index
    %c27 = arith.constant 27 : index
    %c0_91 = arith.constant 0 : index
    %c0_92 = arith.constant 0 : index
    %206 = vector.load %arg4[%c0_90, %c27, %c0_91, %c0_92] : memref<1x32x32x128xbf16, #tpu.memory_space<vmem>>, vector<1x1x32x128xbf16>
    %207 = vector.shape_cast %206 : vector<1x1x32x128xbf16> to vector<32x128xbf16>
    %208 = arith.extf %207 : vector<32x128xbf16> to vector<32x128xf32>
    %209 = vector.broadcast %205 : vector<1x128xf32> to vector<32x128xf32>
    %210 = arith.mulf %209, %208 : vector<32x128xf32>
    %211 = arith.addf %204, %210 : vector<32x128xf32>
    %212 = vector.extract_strided_slice %16 {offsets = [28, 0], sizes = [1, 128], strides = [1, 1]} : vector<32x128xf32> to vector<1x128xf32>
    %c0_93 = arith.constant 0 : index
    %c28 = arith.constant 28 : index
    %c0_94 = arith.constant 0 : index
    %c0_95 = arith.constant 0 : index
    %213 = vector.load %arg4[%c0_93, %c28, %c0_94, %c0_95] : memref<1x32x32x128xbf16, #tpu.memory_space<vmem>>, vector<1x1x32x128xbf16>
    %214 = vector.shape_cast %213 : vector<1x1x32x128xbf16> to vector<32x128xbf16>
    %215 = arith.extf %214 : vector<32x128xbf16> to vector<32x128xf32>
    %216 = vector.broadcast %212 : vector<1x128xf32> to vector<32x128xf32>
    %217 = arith.mulf %216, %215 : vector<32x128xf32>
    %218 = arith.addf %211, %217 : vector<32x128xf32>
    %219 = vector.extract_strided_slice %16 {offsets = [29, 0], sizes = [1, 128], strides = [1, 1]} : vector<32x128xf32> to vector<1x128xf32>
    %c0_96 = arith.constant 0 : index
    %c29 = arith.constant 29 : index
    %c0_97 = arith.constant 0 : index
    %c0_98 = arith.constant 0 : index
    %220 = vector.load %arg4[%c0_96, %c29, %c0_97, %c0_98] : memref<1x32x32x128xbf16, #tpu.memory_space<vmem>>, vector<1x1x32x128xbf16>
    %221 = vector.shape_cast %220 : vector<1x1x32x128xbf16> to vector<32x128xbf16>
    %222 = arith.extf %221 : vector<32x128xbf16> to vector<32x128xf32>
    %223 = vector.broadcast %219 : vector<1x128xf32> to vector<32x128xf32>
    %224 = arith.mulf %223, %222 : vector<32x128xf32>
    %225 = arith.addf %218, %224 : vector<32x128xf32>
    %226 = vector.extract_strided_slice %16 {offsets = [30, 0], sizes = [1, 128], strides = [1, 1]} : vector<32x128xf32> to vector<1x128xf32>
    %c0_99 = arith.constant 0 : index
    %c30 = arith.constant 30 : index
    %c0_100 = arith.constant 0 : index
    %c0_101 = arith.constant 0 : index
    %227 = vector.load %arg4[%c0_99, %c30, %c0_100, %c0_101] : memref<1x32x32x128xbf16, #tpu.memory_space<vmem>>, vector<1x1x32x128xbf16>
    %228 = vector.shape_cast %227 : vector<1x1x32x128xbf16> to vector<32x128xbf16>
    %229 = arith.extf %228 : vector<32x128xbf16> to vector<32x128xf32>
    %230 = vector.broadcast %226 : vector<1x128xf32> to vector<32x128xf32>
    %231 = arith.mulf %230, %229 : vector<32x128xf32>
    %232 = arith.addf %225, %231 : vector<32x128xf32>
    %233 = vector.extract_strided_slice %16 {offsets = [31, 0], sizes = [1, 128], strides = [1, 1]} : vector<32x128xf32> to vector<1x128xf32>
    %c0_102 = arith.constant 0 : index
    %c31 = arith.constant 31 : index
    %c0_103 = arith.constant 0 : index
    %c0_104 = arith.constant 0 : index
    %234 = vector.load %arg4[%c0_102, %c31, %c0_103, %c0_104] : memref<1x32x32x128xbf16, #tpu.memory_space<vmem>>, vector<1x1x32x128xbf16>
    %235 = vector.shape_cast %234 : vector<1x1x32x128xbf16> to vector<32x128xbf16>
    %236 = arith.extf %235 : vector<32x128xbf16> to vector<32x128xf32>
    %237 = vector.broadcast %233 : vector<1x128xf32> to vector<32x128xf32>
    %238 = arith.mulf %237, %236 : vector<32x128xf32>
    %239 = arith.addf %232, %238 : vector<32x128xf32>
    %c0_i32_105 = arith.constant 0 : i32
    %240 = arith.cmpi eq, %arg1, %c0_i32_105 : i32
    %241 = arith.extui %240 : i1 to i32
    %c0_i32_106 = arith.constant 0 : i32
    %242 = arith.cmpi ne, %241, %c0_i32_106 : i32
    scf.if %242 {
      %c0_112 = arith.constant 0 : index
      %c0_113 = arith.constant 0 : index
      %c0_114 = arith.constant 0 : index
      %249 = vector.load %arg5[%c0_112, %c0_113, %c0_114] : memref<1x32x40xf32, #tpu.memory_space<vmem>>, vector<1x32x32xf32>
      %250 = vector.shape_cast %249 : vector<1x32x32xf32> to vector<32x32xf32>
      %251 = arith.truncf %250 : vector<32x32xf32> to vector<32x32xbf16>
      %cst_115 = arith.constant dense<0.000000e+00> : vector<32x128xf32>
      %252 = tpu.matmul %251, %6, %cst_115 {dimension_numbers = #tpu.dot_dimension_numbers<[1], [0], [0], [1], [0, 0, 1, 1], [], []>} : vector<32x32xbf16>, vector<32x128xbf16>, vector<32x128xf32> -> vector<32x128xf32>
      %c0_116 = arith.constant 0 : index
      %c0_117 = arith.constant 0 : index
      %253 = vector.load %arg7[%c0_116, %c0_117] : memref<32x128xf32, #tpu.memory_space<vmem>>, vector<32x128xf32>
      tpu.vector_store %arg7[%c0_116, %c0_117], %252 {strides = array<i32>} : memref<32x128xf32, #tpu.memory_space<vmem>>, vector<32x128xf32>,
    } else {
    }
    %c0_107 = arith.constant 0 : index
    %c0_108 = arith.constant 0 : index
    %243 = vector.load %arg7[%c0_107, %c0_108] : memref<32x128xf32, #tpu.memory_space<vmem>>, vector<32x128xf32>
    %244 = arith.addf %243, %239 : vector<32x128xf32>
    %c0_109 = arith.constant 0 : index
    %c0_110 = arith.constant 0 : index
    %245 = vector.load %arg7[%c0_109, %c0_110] : memref<32x128xf32, #tpu.memory_space<vmem>>, vector<32x128xf32>
    tpu.vector_store %arg7[%c0_109, %c0_110], %244 {strides = array<i32>} : memref<32x128xf32, #tpu.memory_space<vmem>>, vector<32x128xf32>,
    %c4_i32 = arith.constant 4 : i32
    %246 = arith.cmpi eq, %arg1, %c4_i32 : i32
    %247 = arith.extui %246 : i1 to i32
    %c0_i32_111 = arith.constant 0 : i32
    %248 = arith.cmpi ne, %247, %c0_i32_111 : i32
    scf.if %248 {
      %c0_112 = arith.constant 0 : index
      %c0_113 = arith.constant 0 : index
      %c32 = arith.constant 32 : index
      %249 = vector.load %arg5[%c0_112, %c0_113, %c32] : memref<1x32x40xf32, #tpu.memory_space<vmem>>, vector<1x32x1xf32>
      %250 = vector.shape_cast %249 : vector<1x32x1xf32> to vector<32x1xf32>
      %c0_114 = arith.constant 0 : index
      %c0_115 = arith.constant 0 : index
      %c33 = arith.constant 33 : index
      %251 = vector.load %arg5[%c0_114, %c0_115, %c33] : memref<1x32x40xf32, #tpu.memory_space<vmem>>, vector<1x32x1xf32>
      %252 = vector.shape_cast %251 : vector<1x32x1xf32> to vector<32x1xf32>
      %c0_116 = arith.constant 0 : index
      %c0_117 = arith.constant 0 : index
      %c34 = arith.constant 34 : index
      %253 = vector.load %arg5[%c0_116, %c0_117, %c34] : memref<1x32x40xf32, #tpu.memory_space<vmem>>, vector<1x32x1xf32>
      %254 = vector.shape_cast %253 : vector<1x32x1xf32> to vector<32x1xf32>
      %c0_118 = arith.constant 0 : index
      %c0_119 = arith.constant 0 : index
      %255 = vector.load %arg7[%c0_118, %c0_119] : memref<32x128xf32, #tpu.memory_space<vmem>>, vector<32x128xf32>
      %256 = vector.broadcast %250 : vector<32x1xf32> to vector<32x128xf32>
      %257 = arith.addf %255, %256 : vector<32x128xf32>
      %cst_120 = arith.constant 0.000000e+00 : f32
      %258 = vector.broadcast %cst_120 : f32 to vector<32x128xf32>
      %259 = arith.cmpf ogt, %257, %258 : vector<32x128xf32>
      %260 = math.exp %257 : vector<32x128xf32>
      %cst_121 = arith.constant 1.000000e+00 : f32
      %261 = vector.broadcast %cst_121 : f32 to vector<32x128xf32>
      %262 = arith.subf %260, %261 : vector<32x128xf32>
      %263 = arith.select %259, %257, %262 : vector<32x128xi1>, vector<32x128xf32>
      %264 = vector.broadcast %252 : vector<32x1xf32> to vector<32x128xf32>
      %265 = arith.mulf %263, %264 : vector<32x128xf32>
      %266 = vector.broadcast %254 : vector<32x1xf32> to vector<32x128xf32>
      %267 = arith.addf %265, %266 : vector<32x128xf32>
      %c0_122 = arith.constant 0 : index
      %c0_123 = arith.constant 0 : index
      %268 = vector.load %arg6[%c0_122, %c0_123] : memref<32x128xf32, #tpu.memory_space<vmem>>, vector<32x128xf32>
      tpu.vector_store %arg6[%c0_122, %c0_123], %267 {strides = array<i32>} : memref<32x128xf32, #tpu.memory_space<vmem>>, vector<32x128xf32>,
    } else {
    }
    return
  }
  func.func @transform_0(%arg0: i32, %arg1: i32) -> (i32, i32, i32) {
    %c0_i32 = arith.constant 0 : i32
    %c0_i32_0 = arith.constant 0 : i32
    %c0_i32_1 = arith.constant 0 : i32
    return %arg1, %c0_i32, %c0_i32_0 : i32, i32, i32
  }
  func.func @transform_1(%arg0: i32, %arg1: i32) -> (i32, i32) {
    %c0_i32 = arith.constant 0 : i32
    %c0_i32_0 = arith.constant 0 : i32
    %c0_i32_1 = arith.constant 0 : i32
    return %c0_i32, %c0_i32_0 : i32, i32
  }
  func.func @transform_2(%arg0: i32, %arg1: i32) -> (i32, i32, i32, i32) {
    %c0_i32 = arith.constant 0 : i32
    %c0_i32_0 = arith.constant 0 : i32
    %c0_i32_1 = arith.constant 0 : i32
    return %arg0, %c0_i32, %c0_i32_0, %arg1 : i32, i32, i32, i32
  }
  func.func @transform_3(%arg0: i32, %arg1: i32) -> (i32, i32, i32) {
    %c0_i32 = arith.constant 0 : i32
    %c0_i32_0 = arith.constant 0 : i32
    %c0_i32_1 = arith.constant 0 : i32
    return %arg0, %c0_i32, %c0_i32_0 : i32, i32, i32
  }
  func.func @transform_4(%arg0: i32, %arg1: i32) -> (i32, i32) {
    %c0_i32 = arith.constant 0 : i32
    %c0_i32_0 = arith.constant 0 : i32
    %c0_i32_1 = arith.constant 0 : i32
    return %c0_i32, %c0_i32_0 : i32, i32
  }
}

</mosaic_0001>

<bundles_post_ra>
// kernel: custom-call
= control target key start
LH: loop header
LB: loop body
LE: loop exit
PB: predicated region body
PF: predicated region fallthrough
CT: control target
= control target key end

     0   :  { %s6_s0 = inlined_call_operand.vmem [shape: u32[64], index: 0, kind: output, shape index: {}]  }

// kernel: sub.69
= control target key start
LH: loop header
LB: loop body
LE: loop exit
PB: predicated region body
PF: predicated region fallthrough
CT: control target
= control target key end

     0   :  { %s100_s0 = inlined_call_operand.vmem [shape: f32[32,1], index: 0, kind: input, shape index: {}]   ;;  %s101_s1 = inlined_call_operand.vmem [shape: f32[32,1], index: 1, kind: input, shape index: {}]   ;;  %s102_s2 = inlined_call_operand.vmem [shape: f32[32,1], index: 2, kind: output, shape index: {}]  }
   0x1   :  { %v3_v0 = vld [vmem:[%s100_s0] sm:$0xff]  ;;  %v40_v2 = vld [vmem:[%s100_s0 + $0x8] sm:$0xff]  ;;  %v43_v5 = vld [vmem:[%s100_s0 + $0x10] sm:$0xff] }
   0x2   :  { %v4_v1 = vld [vmem:[%s101_s1] sm:$0xff]  ;;  %v41_v4 = vld [vmem:[%s101_s1 + $0x8] sm:$0xff]  ;;  %v44_v6 = vld [vmem:[%s101_s1 + $0x10] sm:$0xff] }
   0x3   :  { %v7_v3 = vsub.f32 %v3_v0, %v4_v1  ;;  %v16_v7 = vsub.f32 %v40_v2, %v41_v4  ;;  %v26_v8 = vsub.f32 %v43_v5, %v44_v6  ;;  %v46_v9 = vld [vmem:[%s100_s0 + $0x18] sm:$0xff] }
   0x4   :  { %v47_v10 = vld [vmem:[%s101_s1 + $0x18] sm:$0xff] }
   0x5   :  { %9 = vst [vmem:[%s102_s2] sm:$0xff] %v7_v3  ;;  %v36_v11 = vsub.f32 %v46_v9, %v47_v10  ;;  %42 = vst [vmem:[%s102_s2 + $0x8] sm:$0xff] %v16_v7 }
   0x6   :  { %45 = vst [vmem:[%s102_s2 + $0x10] sm:$0xff] %v26_v8 }
   0x7   :  { %48 = vst [vmem:[%s102_s2 + $0x18] sm:$0xff] %v36_v11 }

// kernel: net_forward.1
= control target key start
LH: loop header
LB: loop body
LE: loop exit
PB: predicated region body
PF: predicated region fallthrough
CT: control target
= control target key end

     0   :  { %9 = vsyncpa [#allocation4], 0  ;;  %s2998_s0 = inlined_call_operand.vmem [shape: s32[5,1,128], index: 0, kind: input, shape index: {}]   ;;  %s2999_s1 = inlined_call_operand.vmem [shape: f32[32,128], index: 1, kind: input, shape index: {}]   ;;  %s3000_s2 = inlined_call_operand.hbm [shape: bf16[12,32,32,640], index: 2, kind: input, shape index: {}]   ;;  %s3001_s3 = inlined_call_operand.vmem [shape: f32[12,32,40], index: 3, kind: input, shape index: {}]   ;;  %s3002_s4 = inlined_call_operand.vmem [shape: f32[32,128], index: 4, kind: output, shape index: {}]  }
   0x1   :  { %11 = vsyncpa [#allocation4 + $0x1], 0  ;;  %s2050_s15 = smov 0   ;;  %s2052_s16 = smov 0  }
   0x2   :  { %s2054_s17 = smov 0   ;;  %s2056_s18 = smov 0  }
   0x3   :  { %s2058_s19 = smov 0   ;;  %s2060_s20 = smov 0  }
   0x4   :  { %s2062_s21 = smov 0   ;;  %s2064_s22 = smov 0  }
   0x5 LB: > { %s1306_s23 = sadd.s32 4294967295, %s2015_s22   ;;  %s26_s24 = sadd.s32 1, %s2007_s20  ;;  %s2015_s22 = sphi %s2064_s22, %s17_s22   ;;  %s2011_s21 = sphi %s2062_s21, %s3269_s21   ;;  %s2007_s20 = sphi %s2060_s20, %s3268_s20   ;;  %s2003_s19 = sphi %s2058_s19, %s3267_s19   ;;  %s1999_s18 = sphi %s2056_s18, %s3266_s18   ;;  %s1995_s17 = sphi %s2054_s17, %s3265_s17   ;;  %s1991_s16 = sphi %s2052_s16, %s3264_s16   ;;  %s1987_s15 = sphi %s2050_s15, %s3263_s15  }
   0x6   : > { %p27_p0 = scmp.ge.s32.totalorder %s26_s24, 5  ;;  %s29_s25 = sadd.s32 1, %s2011_s21 }
   0x7   : > { %s85_s26 = sadd.s32 1, %s1995_s17  ;;  %p92_p1 = scmp.ne.s32.totalorder %s1995_s17, %s1991_s16 }
   0x8   : > { %s3271_s24 = smov (%p27_p0, %s26_s24), 0  ;;  %s3273_s25 = smov (!%p27_p0, %s29_s25), %s2011_s21 }
   0x9   : > { %s81_s27 = ssub.s32 %s2007_s20, %s3271_s24  ;;  %p93_p2 = scmp.eq.s32.totalorder %s2015_s22, 0 }
   0xa   : > { %p31_p3 = scmp.ge.s32.totalorder %s3273_s25, 12  ;;  %p98_p4 = scmp.ne.s32.totalorder %s1991_s16, %s1987_s15 }
   0xb   : > { %p2101_p5 = por %p93_p2, %p92_p1  ;;  %p99_p6 = scmp.eq.s32.totalorder %s1306_s23, 0 }
   0xc   : > { %s3275_s25 = smov (%p31_p3, %s3273_s25), 0  ;;  %p1835_p8 = scmp.lt.s32.totalorder %s2015_s22, 60 }
   0xd   : > { %3063 = sst [smem:[#allocation6_spill]] %s3275_s25  ;;  %p2107_p7 = por %p99_p6, %p98_p4 }
   0xe   : > { %s80_s30 = ssub.s32 %s2011_s21, %s3275_s25  ;;  %s178_s6 = sand.u32 1, %s1995_s17  }
   0xf   : > { %s82_s5 = sor.u32 %s81_s27, %s80_s30  ;;  %s1309_s7 = sshll.u32 %s178_s6, 9 }
  0x10   : > { %p83_p9 = scmp.eq.s32.totalorder %s82_s5, 0  ;;  %s1828_s8 = smul.u32 640, %s2011_s21 }
  0x11   : > { %s182_s12 = scalar_lea.vmem [#allocation3], %s1309_s7  ;;  %p2127_p10 = pnand %p1835_p8, %p2101_p5 }
  0x12   : > { %s2117_s9 = scalar_select %p83_p9, %s1995_s17, %s85_s26  }
  0x13   : > { %s187_s10 = sadd.s32 %s2007_s20, %s1828_s8  ;;  %s190_s13 = sshll.u32 %s182_s12, 4  ;;  %s191_s13 = int_to_ptr.vmem [resolvable:$true] %s190_s13 }
  0x14   : > { %s1310_s11 = sshll.u32 %s187_s10, 6  ;;  %p1311_p11 = scmp.ge.s32.totalorder %s2015_s22, 1 }
  0x15   : > { %s189_s23 = scalar_lea.hbm %s3000_s2, %s1310_s11  ;;  %s179_s27 = scalar_lea.sflag [#allocation4], %s178_s6 }
  0x16   : > { %p1923_p12 = pneg %p2127_p10  ;;  %s1934_s26 = scalar_lea.vmem %s191_s13, 8192 }
  0x17   : > { %p1935_p13 = scmp.ne.s32.totalorder %s191_s13, %s1934_s26  ;;  %s2017_s30 = smov [#allocation3]  }
  0x18   : > { %s1939_s5 = sshll.u32 %s2017_s30, 4  ;;  %s1940_s5 = int_to_ptr.vmem [resolvable:$false] %s1939_s5 }
  0x19   : > { %p1937_p0 = pnand %p1935_p13, %p1923_p12  ;;  %s1941_s7 = scalar_lea.vmem %s1940_s5, 16384 }
  0x1a   : > { %p1942_p2 = scmp.lt.s32.totalorder %s191_s13, %s1940_s5  ;;  %p1943_p3 = scmp.lt.s32.totalorder %s1941_s7, %s1934_s26 }
  0x1b   : > { %p1938_p1 = pneg %p1937_p0 }
  0x1c   : > { %p1944_p4 = por %p1943_p3, %p1942_p2 }
  0x1e   : > { %p1945_p5 = pnand %p1944_p4, %p1938_p1 }
  0x20   : > { %1948 = shalt.err (!%p1945_p5)
}
  0x21   : > { %s2018_s28 = smov 320   ;;  %s2019_s6 = smov 64  }
  0x22   : > { %s2020_s8 = smov 4   ;;  %p206_p6 = scmp.lt.s32.totalorder %s2015_s22, 61 }
  0x23   : > { %1834 = dma.hbm_to_vmem [thread:$0]  (!%p2127_p10), %s189_s23, 8192, %s191_s13, %s179_s27, %s2018_s28, %s2019_s6, %s2020_s8  }
  0x24   : > { %p207_p8 = pnand %p1311_p11, %p206_p6 }
  0x26   : > { %210 = sbr.rel (%p207_p8) target bundleno = 775 (0x307), region = 36 }
  0x2b   : > { %s212_s10 = sand.u32 1, %s1991_s16  }
  0x2c   : > { %s1312_s11 = sshll.u32 %s212_s10, 9  ;;  %s213_s12 = scalar_lea.sflag [#allocation4], %s212_s10 }
  0x2d   : > { %s2140_s14 = scalar_lea.vmem [#allocation3], %s1312_s11 }
  0x2e   : > { %1982 = dma.done.wait (%p2107_p7), %s213_s12, 8192  }
  0x2f   : > { %1984 = vsyncadd (%p2107_p7), %s213_s12, 4294959104  ;;  %p244_p9 = scmp.lt.s32.totalorder %s1999_s18, 4  ;;  %p247_p10 = scmp.lt.s32.totalorder %s2003_s19, 11 }
  0x30   : > { %p253_p11 = scmp.eq.s32.totalorder %s2003_s19, 0  ;;  %p254_p12 = scmp.eq.s32.totalorder %s1999_s18, 0 }
  0x31   : > { %s245_s25 = scalar_select %p244_p9, %s1999_s18, 4 }
  0x32   : > { %s3277_s19 = smov (!%p247_p10, %s2003_s19), 11  ;;  %p255_p13 = pnand %p254_p12, %p253_p11 }
  0x33   : > { %s246_s23 = scalar_lea.vmem %s2998_s0, %s245_s25  ;;  %s1466_s27 = sshll.u32 %s3277_s19, 5 }
  0x34   : > { %s2158_s30 = scalar_lea.vmem %s3001_s3, %s1466_s27  ;;  %258 = sbr.rel (%p255_p13) target bundleno = 60 (0x3c), region = 44 }
  0x39   : > { %v259_v0 = vld [vmem:[%s2999_s1] sm:$0xff]  ;;  %v260_v1 = vld [vmem:[%s2999_s1 + $0x8] sm:$0xff]  ;;  %v261_v2 = vld [vmem:[%s2999_s1 + $0x10] sm:$0xff] }
  0x3a   : > { %263 = vst [vmem:[%s3002_s4] sm:$0xff] %v259_v0  ;;  %264 = vst [vmem:[%s3002_s4 + $0x8] sm:$0xff] %v260_v1  ;;  %v262_v3 = vld [vmem:[%s2999_s1 + $0x18] sm:$0xff] }
  0x3b   : > { %265 = vst [vmem:[%s3002_s4 + $0x10] sm:$0xff] %v261_v2  ;;  %266 = vst [vmem:[%s3002_s4 + $0x18] sm:$0xff] %v262_v3 }
  0x3c PF: > { %v274_v4 = vlaneseq  ;;  %v1315_v9 = vld [vmem:[%s246_s23] ss:$0 sm:$0xff]  ;;  %v2021_v16 = vmov 1.0|1.0   ;;  %v2224_v30 = vld [vmem:[%s2140_s14 + $0x108] sm:$0xff]   ;;  %v2239_v35 = vld [vmem:[%s2140_s14 + $0x110] sm:$0xff]  }
  0x3d   : > { %v2221_v29 = vld [vmem:[%s2140_s14 + $0x100] sm:$0xff]   ;;  %v2242_v36 = vld [vmem:[%s2140_s14 + $0x118] sm:$0xff]   ;;  %v2260_v42 = vld [vmem:[%s2140_s14 + $0x128] sm:$0xff]   ;;  %p1456_p7 = scmp.ne.s32.totalorder %s1999_s18, 0 }
  0x3e   : > { %v2192_v8 = vshrl.u32 %v274_v4, 7  ;;  %v2257_v41 = vld [vmem:[%s2140_s14 + $0x120] sm:$0xff]   ;;  %v2267_v47 = vld [vmem:[%s2140_s14 + $0x130] sm:$0xff]   ;;  %v2270_v48 = vld [vmem:[%s2140_s14 + $0x138] sm:$0xff]  }
  0x3f   : > { %3068 = vst [vmem:[#allocation9_spill] sm:$0xff] %v2270_v48  ;;  %v2277_v53 = vld [vmem:[%s2140_s14 + $0x140] sm:$0xff]   ;;  %v2280_v54 = vld [vmem:[%s2140_s14 + $0x148] sm:$0xff]   ;;  %v2287_v59 = vld [vmem:[%s2140_s14 + $0x150] sm:$0xff]  }
  0x40   : > { %v289_v10 = vadd.s32 112, %v2192_v8  ;;  %v290_v11 = vadd.s32 120, %v2192_v8  ;;  %v287_v12 = vadd.s32 96, %v2192_v8  ;;  %v288_v13 = vadd.s32 104, %v2192_v8  ;;  %3069 = vst [vmem:[#allocation10_spill] sm:$0xff] %v2277_v53  ;;  %3070 = vst [vmem:[#allocation11_spill] sm:$0xff] %v2280_v54 }
  0x41   : > { %v267_v5 = vld [vmem:[%s3002_s4] sm:$0xff]  ;;  %v268_v6 = vld [vmem:[%s3002_s4 + $0x8] sm:$0xff]  ;;  %v285_v14 = vadd.s32 80, %v2192_v8  ;;  %v286_v15 = vadd.s32 88, %v2192_v8  ;;  %v283_v17 = vadd.s32 64, %v2192_v8  ;;  %v284_v18 = vadd.s32 72, %v2192_v8 }
  0x42   : > { %v2190_v7 = vpack.c.bf16 %v268_v6, %v267_v5  ;;  %vm309_vm0 = vcmp.eq.s32.totalorder %v289_v10, %v1315_v9  ;;  %vm310_vm1 = vcmp.eq.s32.totalorder %v290_v11, %v1315_v9  ;;  %vm307_vm2 = vcmp.eq.s32.totalorder %v287_v12, %v1315_v9  ;;  %v269_v26 = vld [vmem:[%s3002_s4 + $0x10] sm:$0xff]  ;;  %v270_v27 = vld [vmem:[%s3002_s4 + $0x18] sm:$0xff]  ;;  %3071 = vst [vmem:[#allocation12_spill] sm:$0xff] %v2287_v59  ;;  %v2297_v1 = vld [vmem:[%s2140_s14 + $0x160] sm:$0xff]  }
  0x43   : > { %vm308_vm3 = vcmp.eq.s32.totalorder %v288_v13, %v1315_v9  ;;  %vm1316_vm4 = vmpackc.low %vm310_vm1, %vm309_vm0  ;;  %vm305_vm6 = vcmp.eq.s32.totalorder %v285_v14, %v1315_v9  ;;  %vm306_vm7 = vcmp.eq.s32.totalorder %v286_v15, %v1315_v9  ;;  %vm303_vm9 = vcmp.eq.s32.totalorder %v283_v17, %v1315_v9  ;;  %v2290_v60 = vld [vmem:[%s2140_s14 + $0x158] sm:$0xff]   ;;  %3073 = vst [vmem:[#allocation14_spill] sm:$0xff] %v2297_v1  ;;  %v2300_v2 = vld [vmem:[%s2140_s14 + $0x168] sm:$0xff]  }
  0x44   : > { %3066 = vst [vmem:[#allocation7_spill] sm:$0xff] %v2190_v7  ;;  %1816 = vmatprep.mubr.bf16.mxu0 %v2190_v7  ;;  %1800 = vmatprep.subr.msk.bf16.mxu0 %vm1316_vm4, %v2021_v16  ;;  %vm1318_vm5 = vmpackc.low %vm308_vm3, %vm307_vm2  ;;  %vm304_vm10 = vcmp.eq.s32.totalorder %v284_v18, %v1315_v9  ;;  %v281_v19 = vadd.s32 48, %v2192_v8  ;;  %v282_v20 = vadd.s32 56, %v2192_v8  ;;  %v279_v21 = vadd.s32 32, %v2192_v8  ;;  %v2317_v14 = vld [vmem:[%s2140_s14] sm:$0xff]   ;;  %v2320_v15 = vld [vmem:[%s2140_s14 + $0x8] sm:$0xff]  }
  0x45   : > { %1801 = vmatpush3.bf16.msk.msra.mxu0 %vm1316_vm4, %v2021_v16  ;;  %vm1320_vm8 = vmpackc.low %vm306_vm7, %vm305_vm6  ;;  %v280_v22 = vadd.s32 40, %v2192_v8  ;;  %v277_v23 = vadd.s32 16, %v2192_v8  ;;  %v278_v24 = vadd.s32 24, %v2192_v8  ;;  %v276_v25 = vadd.s32 8, %v2192_v8  ;;  %3072 = vst [vmem:[#allocation13_spill] sm:$0xff] %v2290_v60  ;;  %v2357_v11 = vld [vmem:[%s2140_s14 + $0x40] sm:$0xff]  }
  0x46   : > { %1802 = vmatprep.subr.msk.bf16.mxu0 %vm1318_vm5, %v2021_v16  ;;  %vm1322_vm11 = vmpackc.low %vm304_vm10, %vm303_vm9  ;;  %vm301_vm12 = vcmp.eq.s32.totalorder %v281_v19, %v1315_v9  ;;  %vm302_vm13 = vcmp.eq.s32.totalorder %v282_v20, %v1315_v9  ;;  %vm299_vm15 = vcmp.eq.s32.totalorder %v279_v21, %v1315_v9  ;;  %v2217_v28 = vpack.c.bf16 %v270_v27, %v269_v26  ;;  %v2327_v20 = vld [vmem:[%s2140_s14 + $0x10] sm:$0xff]   ;;  %v2330_v21 = vld [vmem:[%s2140_s14 + $0x18] sm:$0xff]  }
  0x47   : > { %vm1324_vm14 = vmpackc.low %vm302_vm13, %vm301_vm12  ;;  %vm300_vm0 = vcmp.eq.s32.totalorder %v280_v22, %v1315_v9  ;;  %vm297_vm2 = vcmp.eq.s32.totalorder %v277_v23, %v1315_v9  ;;  %vm298_vm3 = vcmp.eq.s32.totalorder %v278_v24, %v1315_v9  ;;  %vm296_vm6 = vcmp.eq.s32.totalorder %v276_v25, %v1315_v9  ;;  %3074 = vst [vmem:[#allocation15_spill] sm:$0xff] %v2300_v2  ;;  %v2337_v26 = vld [vmem:[%s2140_s14 + $0x20] sm:$0xff]   ;;  %v2340_v27 = vld [vmem:[%s2140_s14 + $0x28] sm:$0xff]  }
  0x48   : > { %vm1326_vm1 = vmpackc.low %vm300_vm0, %vm299_vm15  ;;  %3067 = vst [vmem:[#allocation8_spill] sm:$0xff] %v2217_v28  ;;  %v2227_v31 = vsub.s32 0, %v2192_v8  ;;  %v2230_v32 = vsub.s32 1, %v2192_v8  ;;  %v2233_v33 = vsub.s32 2, %v2192_v8  ;;  %v2236_v34 = vsub.s32 3, %v2192_v8  ;;  %v2347_v23 = vld [vmem:[%s2140_s14 + $0x30] sm:$0xff]  }
  0x49   : > { %1803 = vmatpush3.bf16.msk.msra.mxu0 %vm1318_vm5, %v2021_v16  ;;  %vm1328_vm4 = vmpackc.low %vm298_vm3, %vm297_vm2  ;;  %vm295_vm5 = vcmp.eq.s32.totalorder %v2192_v8, %v1315_v9  ;;  %v2245_v37 = vsub.s32 4, %v2192_v8  ;;  %v2248_v38 = vsub.s32 5, %v2192_v8  ;;  %v2251_v39 = vsub.s32 6, %v2192_v8  ;;  %v2310_v9 = vld [vmem:[%s2140_s14 + $0x178] sm:$0xff]   ;;  %v2360_v10 = vld [vmem:[%s2140_s14 + $0x48] sm:$0xff]  }
  0x4a   : > { %1804 = vmatprep.subr.msk.bf16.mxu0 %vm1320_vm8, %v2021_v16  ;;  %vm1330_vm7 = vmpackc.low %vm296_vm6, %vm295_vm5  ;;  %v2254_v40 = vsub.s32 7, %v2192_v8  ;;  %v2307_v8 = vld [vmem:[%s2140_s14 + $0x170] sm:$0xff]   ;;  %3076 = vst [vmem:[#allocation17_spill] sm:$0xff] %v2310_v9  ;;  %v2370_v63 = vld [vmem:[%s2140_s14 + $0x58] sm:$0xff]   ;;  %v3098_v9 = vunpack.c.h.bf16 %v2327_v20  ;;  %v3099_v2 = vunpack.c.l.bf16 %v2330_v21 }
  0x4b   : > { %3075 = vst [vmem:[#allocation16_spill] sm:$0xff] %v2307_v8  ;;  %v2367_v0 = vld [vmem:[%s2140_s14 + $0x50] sm:$0xff]   ;;  %v2377_v56 = vld [vmem:[%s2140_s14 + $0x60] sm:$0xff]   ;;  %v2380_v55 = vld [vmem:[%s2140_s14 + $0x68] sm:$0xff]  }
  0x4c   : > { %v2387_v46 = vld [vmem:[%s2140_s14 + $0x70] sm:$0xff]   ;;  %v2390_v45 = vld [vmem:[%s2140_s14 + $0x78] sm:$0xff]   ;;  %v2397_v51 = vld [vmem:[%s2140_s14 + $0x180] sm:$0xff]  }
  0x4d   : > { %1805 = vmatpush3.bf16.msk.msra.mxu0 %vm1320_vm8, %v2021_v16  ;;  %3077 = vst [vmem:[#allocation18_spill] sm:$0xff] %v2397_v51  ;;  %v2400_v58 = vld [vmem:[%s2140_s14 + $0x188] sm:$0xff]   ;;  %v2407_v43 = vld [vmem:[%s2140_s14 + $0x190] sm:$0xff]   ;;  %v2410_v62 = vld [vmem:[%s2140_s14 + $0x198] sm:$0xff]  }
  0x4e   : > { %1806 = vmatprep.subr.msk.bf16.mxu0 %vm1322_vm11, %v2021_v16  ;;  %3078 = vst [vmem:[#allocation19_spill] sm:$0xff] %v2400_v58  ;;  %3079 = vst [vmem:[#allocation20_spill] sm:$0xff] %v2407_v43  ;;  %v2417_v50 = vld [vmem:[%s2140_s14 + $0x1a0] sm:$0xff]   ;;  %v2420_v4 = vld [vmem:[%s2140_s14 + $0x1a8] sm:$0xff]  }
  0x4f   : > { %3080 = vst [vmem:[#allocation21_spill] sm:$0xff] %v2410_v62  ;;  %3081 = vst [vmem:[#allocation22_spill] sm:$0xff] %v2417_v50  ;;  %v2427_v52 = vld [vmem:[%s2140_s14 + $0x1b0] sm:$0xff]   ;;  %v2430_v6 = vld [vmem:[%s2140_s14 + $0x1b8] sm:$0xff]   ;;  %v3093_v50 = vunpack.c.l.bf16 %v2317_v14 }
  0x50   : > { %3082 = vst [vmem:[#allocation23_spill] sm:$0xff] %v2420_v4  ;;  %3083 = vst [vmem:[#allocation24_spill] sm:$0xff] %v2427_v52  ;;  %v2437_v44 = vld [vmem:[%s2140_s14 + $0x1c0] sm:$0xff]   ;;  %v2440_v13 = vld [vmem:[%s2140_s14 + $0x1c8] sm:$0xff]  }
  0x51   : > { %1807 = vmatpush3.bf16.msk.msra.mxu0 %vm1322_vm11, %v2021_v16  ;;  %3084 = vst [vmem:[#allocation25_spill] sm:$0xff] %v2430_v6  ;;  %3085 = vst [vmem:[#allocation26_spill] sm:$0xff] %v2437_v44  ;;  %v2447_v3 = vld [vmem:[%s2140_s14 + $0x1d0] sm:$0xff]   ;;  %v2450_v12 = vld [vmem:[%s2140_s14 + $0x1d8] sm:$0xff]   ;;  %v3096_v44 = vunpack.c.h.bf16 %v2320_v15 }
  0x52   : > { %1808 = vmatprep.subr.msk.bf16.mxu0 %vm1324_vm14, %v2021_v16  ;;  %3086 = vst [vmem:[#allocation27_spill] sm:$0xff] %v2440_v13  ;;  %3087 = vst [vmem:[#allocation28_spill] sm:$0xff] %v2447_v3  ;;  %v2459_v24 = vld [vmem:[%s2140_s14 + $0x1e0] sm:$0xff]   ;;  %v2462_v22 = vld [vmem:[%s2140_s14 + $0x1e8] sm:$0xff]   ;;  %v3097_v13 = vunpack.c.l.bf16 %v2327_v20 }
  0x53   : > { %3088 = vst [vmem:[#allocation29_spill] sm:$0xff] %v2450_v12  ;;  %3089 = vst [vmem:[#allocation30_spill] sm:$0xff] %v2459_v24  ;;  %v2469_v17 = vld [vmem:[%s2140_s14 + $0x1f0] sm:$0xff]   ;;  %v2472_v7 = vld [vmem:[%s2140_s14 + $0x1f8] sm:$0xff]   ;;  %v3094_v24 = vunpack.c.h.bf16 %v2317_v14  ;;  %v3100_v14 = vunpack.c.h.bf16 %v2330_v21 }
  0x54   : > { %3090 = vst [vmem:[#allocation31_spill] sm:$0xff] %v2462_v22  ;;  %3091 = vst [vmem:[#allocation32_spill] sm:$0xff] %v2469_v17  ;;  %v2479_v6 = vld [vmem:[%s2140_s14 + $0x80] sm:$0xff]   ;;  %v2482_v18 = vld [vmem:[%s2140_s14 + $0x88] sm:$0xff]  }
  0x55   : > { %1809 = vmatpush3.bf16.msk.msra.mxu0 %vm1324_vm14, %v2021_v16  ;;  %3092 = vst [vmem:[#allocation33_spill] sm:$0xff] %v2472_v7  ;;  %v2489_v57 = vld [vmem:[%s2140_s14 + $0x90] sm:$0xff]   ;;  %v2492_v3 = vld [vmem:[%s2140_s14 + $0x98] sm:$0xff]   ;;  %v2501_v19 = vld [vmem:[%s2140_s14 + $0xa0] sm:$0xff]   ;;  %v3095_v7 = vunpack.c.l.bf16 %v2320_v15 }
  0x56   : > { %1810 = vmatprep.subr.msk.bf16.mxu0 %vm1326_vm1, %v2021_v16  ;;  %v2508_v52 = vld [vmem:[%s2140_s14 + $0xa8] sm:$0xff]   ;;  %v2511_v49 = vld [vmem:[%s2140_s14 + $0xb0] sm:$0xff]   ;;  %v2529_v17 = vld [vmem:[%s2140_s14 + $0xb8] sm:$0xff]  }
  0x57   : > { %v2532_v4 = vld [vmem:[%s2140_s14 + $0xc0] sm:$0xff]   ;;  %v2551_v1 = vld [vmem:[%s2140_s14 + $0xc8] sm:$0xff]   ;;  %v2561_v21 = vld [vmem:[%s2140_s14 + $0xd8] sm:$0xff]  }
  0x59   : > { %1811 = vmatpush3.bf16.msk.msra.mxu0 %vm1326_vm1, %v2021_v16 }
  0x5a   : > { %1812 = vmatprep.subr.msk.bf16.mxu0 %vm1328_vm4, %v2021_v16 }
  0x5d   : > { %1813 = vmatpush3.bf16.msk.msra.mxu0 %vm1328_vm4, %v2021_v16 }
  0x5e   : > { %1814 = vmatprep.subr.msk.bf16.mxu0 %vm1330_vm7, %v2021_v16 }
  0x61   : > { %1815 = vmatpush3.bf16.msk.msra.mxu0 %vm1330_vm7, %v2021_v16  ;;  %v2350_v16 = vld [vmem:[%s2140_s14 + $0x38] sm:$0xff]  }
  0x64   : > { %1817 = vmatmul.mubr.bf16.vlgmr.msra.gmra.mxu0 %v2217_v28 }
 0x124   : > { %v2452_v25 = vpop.f32.mrf.mxu0 }
 0x125   : > { %v2650_v15 = vrot.slane %v2452_v25, %v2254_v40 }
 0x126   : > { %v2494_v28 = vpop.f32.mrf.mxu0 }
 0x127   : > { %v395_v5 = vrot.slane %v2494_v28, %v2227_v31  ;;  %v412_v22 = vrot.slane %v2494_v28, %v2230_v32  ;;  %v433_v61 = vrot.slane %v2494_v28, %v2233_v33  ;;  %3116 = vst [vmem:[#allocation36_spill] sm:$0xff] %v2650_v15  ;;  %v3123_v15 = vunpack.c.l.bf16 %v2224_v30 }
 0x129   : > { %v396_v62 = vmul.f32 %v3093_v50, %v395_v5  ;;  %v397_v43 = vmul.f32 %v3094_v24, %v395_v5  ;;  %v398_v58 = vmul.f32 %v3095_v7, %v395_v5  ;;  %v399_v12 = vmul.f32 %v3096_v44, %v395_v5 }
 0x12a   : > { %v413_v51 = vmul.f32 %v3097_v13, %v412_v22  ;;  %v414_v8 = vmul.f32 %v3098_v9, %v412_v22  ;;  %v415_v50 = vmul.f32 %v3099_v2, %v412_v22  ;;  %v416_v24 = vmul.f32 %v3100_v14, %v412_v22  ;;  %v2558_v2 = vld [vmem:[%s2140_s14 + $0xd0] sm:$0xff]   ;;  %v2580_v14 = vld [vmem:[%s2140_s14 + $0xe8] sm:$0xff]  }
 0x12b   : > { %v454_v22 = vrot.slane %v2494_v28, %v2236_v34  ;;  %v3101_v5 = vunpack.c.l.bf16 %v2337_v26  ;;  %v3105_v7 = vunpack.c.l.bf16 %v2347_v23  ;;  %v3110_v44 = vunpack.c.h.bf16 %v2357_v11 }
 0x12c   : > { %v417_v13 = vadd.f32 %v413_v51, %v396_v62  ;;  %v418_v9 = vadd.f32 %v414_v8, %v397_v43  ;;  %v419_v20 = vadd.f32 %v415_v50, %v398_v58  ;;  %v420_v60 = vadd.f32 %v416_v24, %v399_v12  ;;  %v2577_v24 = vld [vmem:[%s2140_s14 + $0xe0] sm:$0xff]  }
 0x12d   : > { %v434_v43 = vmul.f32 %v3101_v5, %v433_v61  ;;  %v3102_v51 = vunpack.c.h.bf16 %v2337_v26  ;;  %v3103_v62 = vunpack.c.l.bf16 %v2340_v27  ;;  %v3104_v12 = vunpack.c.h.bf16 %v2340_v27  ;;  %v2590_v27 = vld [vmem:[%s2140_s14 + $0xf8] sm:$0xff]  }
 0x12e   : > { %v455_v5 = vmul.f32 %v3105_v7, %v454_v22 }
 0x12f   : > { %v435_v58 = vmul.f32 %v3102_v51, %v433_v61  ;;  %v436_v8 = vmul.f32 %v3103_v62, %v433_v61  ;;  %v437_v50 = vmul.f32 %v3104_v12, %v433_v61  ;;  %v438_v26 = vadd.f32 %v434_v43, %v417_v13  ;;  %v2587_v62 = vld [vmem:[%s2140_s14 + $0xf0] sm:$0xff]  }
 0x130   : > { %v475_v61 = vrot.slane %v2494_v28, %v2245_v37  ;;  %v3106_v13 = vunpack.c.h.bf16 %v2347_v23  ;;  %v3108_v43 = vunpack.c.h.bf16 %v2350_v16  ;;  %v727_v23 = vrot.slane %v2452_v25, %v2227_v31 }
 0x131   : > { %v439_v51 = vadd.f32 %v435_v58, %v418_v9  ;;  %v440_v59 = vadd.f32 %v436_v8, %v419_v20  ;;  %v441_v54 = vadd.f32 %v437_v50, %v420_v60  ;;  %v3107_v60 = vunpack.c.l.bf16 %v2350_v16 }
 0x132   : > { %v456_v9 = vmul.f32 %v3106_v13, %v454_v22  ;;  %v458_v58 = vmul.f32 %v3108_v43, %v454_v22  ;;  %v459_v12 = vadd.f32 %v455_v5, %v438_v26  ;;  %v748_v13 = vrot.slane %v2452_v25, %v2230_v32 }
 0x133   : > { %v457_v20 = vmul.f32 %v3107_v60, %v454_v22  ;;  %v496_v16 = vrot.slane %v2494_v28, %v2248_v38  ;;  %v3109_v60 = vunpack.c.l.bf16 %v2357_v11  ;;  %v477_v5 = vmul.f32 %v3110_v44, %v475_v61 }
 0x134   : > { %v460_v53 = vadd.f32 %v456_v9, %v439_v51  ;;  %v462_v48 = vadd.f32 %v458_v58, %v441_v54  ;;  %v3112_v26 = vunpack.c.h.bf16 %v2360_v10  ;;  %v2626_v9 = vrot.slane %v2452_v25, %v2233_v33 }
 0x135   : > { %v461_v7 = vadd.f32 %v457_v20, %v440_v59  ;;  %v476_v43 = vmul.f32 %v3109_v60, %v475_v61  ;;  %v3111_v59 = vunpack.c.l.bf16 %v2360_v10  ;;  %v2630_v20 = vrot.slane %v2452_v25, %v2236_v34 }
 0x136   : > { %v479_v51 = vmul.f32 %v3112_v26, %v475_v61  ;;  %v2634_v58 = vrot.slane %v2452_v25, %v2245_v37  ;;  %v2638_v11 = vrot.slane %v2452_v25, %v2248_v38  ;;  %v481_v60 = vadd.f32 %v477_v5, %v460_v53 }
 0x137   : > { %v478_v54 = vmul.f32 %v3111_v59, %v475_v61  ;;  %v480_v44 = vadd.f32 %v476_v43, %v459_v12  ;;  %v3114_v59 = vunpack.c.l.bf16 %v2221_v29  ;;  %v2646_v22 = vrot.slane %v2452_v25, %v2251_v39 }
 0x138   : > { %3113 = vst [vmem:[#allocation34_spill] sm:$0xff] %v2638_v11  ;;  %v483_v61 = vadd.f32 %v479_v51, %v462_v48  ;;  %v517_v50 = vrot.slane %v2494_v28, %v2251_v39  ;;  %v3117_v12 = vunpack.c.l.bf16 %v2367_v0  ;;  %v3118_v48 = vunpack.c.h.bf16 %v2367_v0 }
 0x139   : > { %v482_v10 = vadd.f32 %v478_v54, %v461_v7  ;;  %v2642_v26 = vmul.f32 %v3114_v59, %v727_v23  ;;  %3115 = vst [vmem:[#allocation35_spill] sm:$0xff] %v2646_v22  ;;  %v3119_v43 = vunpack.c.l.bf16 %v2370_v63  ;;  %v3120_v54 = vunpack.c.h.bf16 %v2370_v63  ;;  %v2662_v59 = vpop.f32.mrf.mxu0 }
 0x13a   : > { %v497_v53 = vmul.f32 %v3117_v12, %v496_v16  ;;  %v498_v7 = vmul.f32 %v3118_v48, %v496_v16  ;;  %3121 = vst [vmem:[#allocation37_spill] sm:$0xff] %v2662_v59  ;;  %v3122_v25 = vunpack.c.h.bf16 %v2221_v29  ;;  %v2670_v22 = vmul.f32 %v3123_v15, %v727_v23 }
 0x13b   : > { %v499_v5 = vmul.f32 %v3119_v43, %v496_v16  ;;  %v500_v51 = vmul.f32 %v3120_v54, %v496_v16  ;;  %v3124_v12 = vunpack.c.h.bf16 %v2224_v30  ;;  %v538_v48 = vrot.slane %v2494_v28, %v2254_v40 }
 0x13c   : > { %v2666_v8 = vmul.f32 %v3122_v25, %v727_v23  ;;  %v501_v43 = vadd.f32 %v497_v53, %v480_v44  ;;  %v502_v63 = vadd.f32 %v498_v7, %v481_v60  ;;  %v3125_v59 = vunpack.c.l.bf16 %v2239_v35 }
 0x13d   : > { %v2674_v0 = vmul.f32 %v3124_v12, %v727_v23  ;;  %v503_v16 = vadd.f32 %v499_v5, %v482_v10  ;;  %v504_v54 = vadd.f32 %v500_v51, %v483_v61  ;;  %v3126_v25 = vunpack.c.h.bf16 %v2239_v35  ;;  %v372_v5 = vpop.f32.mrf.mxu0 }
 0x13e   : > { %v2680_v29 = vmul.f32 %v3125_v59, %v748_v13  ;;  %v3128_v15 = vunpack.c.l.bf16 %v2242_v36  ;;  %v3130_v23 = vunpack.c.h.bf16 %v2242_v36  ;;  %v3132_v28 = vunpack.c.l.bf16 %v2377_v56 }
 0x13f   : > { %v2684_v11 = vmul.f32 %v3126_v25, %v748_v13  ;;  %v3133_v60 = vunpack.c.h.bf16 %v2377_v56  ;;  %v3134_v61 = vunpack.c.l.bf16 %v2380_v55  ;;  %v3135_v35 = vunpack.c.h.bf16 %v2380_v55 }
 0x140   : > { %v2688_v30 = vmul.f32 %v3128_v15, %v748_v13  ;;  %v2692_v12 = vmul.f32 %v3130_v23, %v748_v13  ;;  %v518_v44 = vmul.f32 %v3132_v28, %v517_v50  ;;  %v3136_v51 = vunpack.c.l.bf16 %v2387_v46 }
 0x141   : > { %3127 = vst [vmem:[#allocation38_spill] sm:$0xff] %v2684_v11  ;;  %v519_v10 = vmul.f32 %v3133_v60, %v517_v50  ;;  %v520_v53 = vmul.f32 %v3134_v61, %v517_v50  ;;  %v521_v7 = vmul.f32 %v3135_v35, %v517_v50  ;;  %v3137_v36 = vunpack.c.h.bf16 %v2387_v46 }
 0x142   : > { %3129 = vst [vmem:[#allocation39_spill] sm:$0xff] %v2688_v30  ;;  %3131 = vst [vmem:[#allocation40_spill] sm:$0xff] %v2692_v12  ;;  %v539_v59 = vmul.f32 %v3136_v51, %v538_v48  ;;  %v3138_v25 = vunpack.c.l.bf16 %v2390_v45  ;;  %v3139_v23 = vunpack.c.h.bf16 %v2390_v45  ;;  %v522_v28 = vadd.f32 %v518_v44, %v501_v43 }
 0x143   : > { %v540_v13 = vmul.f32 %v3137_v36, %v538_v48  ;;  %v523_v60 = vadd.f32 %v519_v10, %v502_v63  ;;  %v524_v12 = vadd.f32 %v520_v53, %v503_v16  ;;  %v525_v61 = vadd.f32 %v521_v7, %v504_v54 }
 0x144   : > { %v541_v15 = vmul.f32 %v3138_v25, %v538_v48  ;;  %v542_v56 = vmul.f32 %v3139_v23, %v538_v48  ;;  %v559_v55 = vrot.slane %v372_v5, %v2227_v31  ;;  %v580_v50 = vrot.slane %v372_v5, %v2230_v32 }
 0x145   : > { %v601_v35 = vrot.slane %v372_v5, %v2233_v33  ;;  %v622_v51 = vrot.slane %v372_v5, %v2236_v34  ;;  %v543_v46 = vadd.f32 %v539_v59, %v522_v28  ;;  %v544_v36 = vadd.f32 %v540_v13, %v523_v60 }
 0x146   : > { %v545_v30 = vadd.f32 %v541_v15, %v524_v12  ;;  %v546_v11 = vadd.f32 %v542_v56, %v525_v61  ;;  %v3140_v25 = vunpack.c.l.bf16 %v2479_v6  ;;  %v3141_v48 = vunpack.c.h.bf16 %v2479_v6 }
 0x147   : > { %v3142_v63 = vunpack.c.l.bf16 %v2482_v18  ;;  %v3143_v54 = vunpack.c.h.bf16 %v2482_v18  ;;  %v3144_v10 = vunpack.c.l.bf16 %v2489_v57  ;;  %v3145_v7 = vunpack.c.h.bf16 %v2489_v57 }
 0x148   : > { %v560_v45 = vmul.f32 %v3140_v25, %v559_v55  ;;  %v561_v43 = vmul.f32 %v3141_v48, %v559_v55  ;;  %v3146_v12 = vunpack.c.l.bf16 %v2492_v3  ;;  %v3147_v15 = vunpack.c.h.bf16 %v2492_v3 }
 0x149   : > { %v562_v16 = vmul.f32 %v3142_v63, %v559_v55  ;;  %v563_v44 = vmul.f32 %v3143_v54, %v559_v55  ;;  %v581_v53 = vmul.f32 %v3144_v10, %v580_v50  ;;  %v582_v59 = vmul.f32 %v3145_v7, %v580_v50 }
 0x14a   : > { %v583_v13 = vmul.f32 %v3146_v12, %v580_v50  ;;  %v584_v23 = vmul.f32 %v3147_v15, %v580_v50  ;;  %v564_v6 = vadd.f32 %v560_v45, %v543_v46  ;;  %v565_v56 = vadd.f32 %v561_v43, %v544_v36 }
 0x14b   : > { %v566_v28 = vadd.f32 %v562_v16, %v545_v30  ;;  %v567_v60 = vadd.f32 %v563_v44, %v546_v11  ;;  %v3148_v61 = vunpack.c.l.bf16 %v2501_v19  ;;  %v3149_v55 = vunpack.c.h.bf16 %v2501_v19 }
 0x14c   : > { %v3150_v48 = vunpack.c.l.bf16 %v2508_v52  ;;  %v3151_v63 = vunpack.c.h.bf16 %v2508_v52  ;;  %v585_v10 = vadd.f32 %v581_v53, %v564_v6  ;;  %v586_v7 = vadd.f32 %v582_v59, %v565_v56 }
 0x14d   : > { %v602_v18 = vmul.f32 %v3148_v61, %v601_v35  ;;  %v603_v25 = vmul.f32 %v3149_v55, %v601_v35  ;;  %v587_v3 = vadd.f32 %v583_v13, %v566_v28  ;;  %v588_v50 = vadd.f32 %v584_v23, %v567_v60 }
 0x14e   : > { %v604_v57 = vmul.f32 %v3150_v48, %v601_v35  ;;  %v605_v54 = vmul.f32 %v3151_v63, %v601_v35  ;;  %v3152_v46 = vunpack.c.l.bf16 %v2511_v49  ;;  %v3153_v11 = vunpack.c.h.bf16 %v2511_v49 }
 0x14f   : > { %v3154_v45 = vunpack.c.l.bf16 %v2529_v17  ;;  %v3155_v43 = vunpack.c.h.bf16 %v2529_v17  ;;  %v606_v44 = vadd.f32 %v602_v18, %v585_v10  ;;  %v607_v12 = vadd.f32 %v603_v25, %v586_v7 }
 0x150   : > { %v623_v30 = vmul.f32 %v3152_v46, %v622_v51  ;;  %v624_v36 = vmul.f32 %v3153_v11, %v622_v51  ;;  %v608_v52 = vadd.f32 %v604_v57, %v587_v3  ;;  %v609_v35 = vadd.f32 %v605_v54, %v588_v50 }
 0x151   : > { %v625_v19 = vmul.f32 %v3154_v45, %v622_v51  ;;  %v626_v16 = vmul.f32 %v3155_v43, %v622_v51  ;;  %v643_v53 = vrot.slane %v372_v5, %v2245_v37  ;;  %v664_v59 = vrot.slane %v372_v5, %v2248_v38 }
 0x152   : > { %v685_v13 = vrot.slane %v372_v5, %v2251_v39  ;;  %v706_v15 = vrot.slane %v372_v5, %v2254_v40  ;;  %v627_v49 = vadd.f32 %v623_v30, %v606_v44  ;;  %v628_v23 = vadd.f32 %v624_v36, %v607_v12 }
 0x153   : > { %v629_v6 = vadd.f32 %v625_v19, %v608_v52  ;;  %v630_v56 = vadd.f32 %v626_v16, %v609_v35  ;;  %v3156_v28 = vunpack.c.l.bf16 %v2532_v4  ;;  %v3157_v51 = vunpack.c.h.bf16 %v2532_v4 }
 0x154   : > { %v3158_v61 = vunpack.c.l.bf16 %v2551_v1  ;;  %v3159_v55 = vunpack.c.h.bf16 %v2551_v1  ;;  %v3160_v48 = vunpack.c.l.bf16 %v2558_v2  ;;  %v3161_v5 = vunpack.c.h.bf16 %v2558_v2 }
 0x155   : > { %v644_v17 = vmul.f32 %v3156_v28, %v643_v53  ;;  %v645_v60 = vmul.f32 %v3157_v51, %v643_v53  ;;  %v3162_v54 = vunpack.c.l.bf16 %v2561_v21  ;;  %v3163_v7 = vunpack.c.h.bf16 %v2561_v21 }
 0x156   : > { %v646_v18 = vmul.f32 %v3158_v61, %v643_v53  ;;  %v647_v25 = vmul.f32 %v3159_v55, %v643_v53  ;;  %v665_v57 = vmul.f32 %v3160_v48, %v664_v59  ;;  %v666_v63 = vmul.f32 %v3161_v5, %v664_v59 }
 0x157   : > { %v667_v10 = vmul.f32 %v3162_v54, %v664_v59  ;;  %v668_v3 = vmul.f32 %v3163_v7, %v664_v59  ;;  %v648_v4 = vadd.f32 %v644_v17, %v627_v49  ;;  %v649_v50 = vadd.f32 %v645_v60, %v628_v23  ;;  %v3178_v7 = vld [vmem:[#allocation9_spill] sm:$0xff] }
 0x158   : > { %v650_v46 = vadd.f32 %v646_v18, %v629_v6  ;;  %v651_v30 = vadd.f32 %v647_v25, %v630_v56  ;;  %v3164_v11 = vunpack.c.l.bf16 %v2577_v24  ;;  %v3165_v36 = vunpack.c.h.bf16 %v2577_v24 }
 0x159   : > { %v3166_v19 = vunpack.c.l.bf16 %v2580_v14  ;;  %v3167_v43 = vunpack.c.h.bf16 %v2580_v14  ;;  %v669_v44 = vadd.f32 %v665_v57, %v648_v4  ;;  %v670_v12 = vadd.f32 %v666_v63, %v649_v50 }
 0x15a   : > { %v686_v1 = vmul.f32 %v3164_v11, %v685_v13  ;;  %v687_v45 = vmul.f32 %v3165_v36, %v685_v13  ;;  %v671_v21 = vadd.f32 %v667_v10, %v650_v46  ;;  %v672_v52 = vadd.f32 %v668_v3, %v651_v30 }
 0x15b   : > { %v688_v2 = vmul.f32 %v3166_v19, %v685_v13  ;;  %v689_v16 = vmul.f32 %v3167_v43, %v685_v13  ;;  %v3168_v35 = vunpack.c.l.bf16 %v2587_v62  ;;  %v3169_v59 = vunpack.c.h.bf16 %v2587_v62 }
 0x15c   : > { %v3170_v23 = vunpack.c.l.bf16 %v2590_v27  ;;  %v3171_v6 = vunpack.c.h.bf16 %v2590_v27  ;;  %v690_v28 = vadd.f32 %v686_v1, %v669_v44  ;;  %v691_v17 = vadd.f32 %v687_v45, %v670_v12  ;;  %v3181_v1 = vld [vmem:[#allocation10_spill] sm:$0xff]  ;;  %v3188_v44 = vld [vmem:[#allocation39_spill] sm:$0xff] }
 0x15d   : > { %v707_v53 = vmul.f32 %v3168_v35, %v706_v15  ;;  %v708_v49 = vmul.f32 %v3169_v59, %v706_v15  ;;  %v692_v14 = vadd.f32 %v688_v2, %v671_v21  ;;  %v693_v13 = vadd.f32 %v689_v16, %v672_v52  ;;  %v3184_v2 = vld [vmem:[#allocation11_spill] sm:$0xff]  ;;  %v3187_v16 = vld [vmem:[#allocation38_spill] sm:$0xff]  ;;  %v3189_v21 = vld [vmem:[#allocation40_spill] sm:$0xff] }
 0x15e   : > { %v709_v24 = vmul.f32 %v3170_v23, %v706_v15  ;;  %v710_v56 = vmul.f32 %v3171_v6, %v706_v15  ;;  %v3172_v51 = vunpack.c.l.bf16 %v2257_v41  ;;  %v3173_v61 = vunpack.c.h.bf16 %v2257_v41  ;;  %v3190_v35 = vld [vmem:[#allocation34_spill] sm:$0xff]  ;;  %v3194_v6 = vld [vmem:[#allocation13_spill] sm:$0xff] }
 0x15f   : > { %v3174_v62 = vunpack.c.l.bf16 %v2260_v42  ;;  %v3175_v27 = vunpack.c.h.bf16 %v2260_v42  ;;  %v711_v25 = vadd.f32 %v707_v53, %v690_v28  ;;  %v712_v48 = vadd.f32 %v708_v49, %v691_v17  ;;  %v3191_v53 = vld [vmem:[#allocation12_spill] sm:$0xff] }
 0x160   : > { %v770_v60 = vmul.f32 %v3172_v51, %v2626_v9  ;;  %v771_v18 = vmul.f32 %v3173_v61, %v2626_v9  ;;  %v713_v57 = vadd.f32 %v709_v24, %v692_v14  ;;  %v714_v5 = vadd.f32 %v710_v56, %v693_v13  ;;  %v3197_v61 = vld [vmem:[#allocation35_spill] sm:$0xff] }
 0x161   : > { %v772_v55 = vmul.f32 %v3174_v62, %v2626_v9  ;;  %v773_v15 = vmul.f32 %v3175_v27, %v2626_v9  ;;  %v3176_v63 = vunpack.c.l.bf16 %v2267_v47  ;;  %v3177_v41 = vunpack.c.h.bf16 %v2267_v47  ;;  %v3198_v62 = vld [vmem:[#allocation14_spill] sm:$0xff] }
 0x162   : > { %v3179_v3 = vunpack.c.l.bf16 %v3178_v7  ;;  %v3180_v42 = vunpack.c.h.bf16 %v3178_v7  ;;  %v732_v50 = vadd.f32 %v2642_v26, %v711_v25  ;;  %v733_v46 = vadd.f32 %v2666_v8, %v712_v48 }
 0x163   : > { %v791_v54 = vmul.f32 %v3176_v63, %v2630_v20  ;;  %v792_v10 = vmul.f32 %v3177_v41, %v2630_v20  ;;  %v734_v30 = vadd.f32 %v2670_v22, %v713_v57  ;;  %v735_v11 = vadd.f32 %v2674_v0, %v714_v5  ;;  %v3201_v5 = vld [vmem:[#allocation15_spill] sm:$0xff] }
 0x164   : > { %v793_v4 = vmul.f32 %v3179_v3, %v2630_v20  ;;  %v794_v9 = vmul.f32 %v3180_v42, %v2630_v20  ;;  %v3182_v47 = vunpack.c.l.bf16 %v3181_v1  ;;  %v3183_v45 = vunpack.c.h.bf16 %v3181_v1  ;;  %v3204_v42 = vld [vmem:[#allocation36_spill] sm:$0xff] }
 0x165   : > { %v3185_v43 = vunpack.c.l.bf16 %v3184_v2  ;;  %v3186_v26 = vunpack.c.h.bf16 %v3184_v2  ;;  %v753_v22 = vadd.f32 %v2680_v29, %v732_v50  ;;  %v754_v0 = vadd.f32 %v3187_v16, %v733_v46  ;;  %v3205_v50 = vld [vmem:[#allocation16_spill] sm:$0xff] }
 0x166   : > { %v812_v36 = vmul.f32 %v3182_v47, %v2634_v58  ;;  %v813_v19 = vmul.f32 %v3183_v45, %v2634_v58  ;;  %v755_v12 = vadd.f32 %v3188_v44, %v734_v30  ;;  %v756_v52 = vadd.f32 %v3189_v21, %v735_v11  ;;  %v3208_v47 = vld [vmem:[#allocation17_spill] sm:$0xff] }
 0x167   : > { %v814_v20 = vmul.f32 %v3185_v43, %v2634_v58  ;;  %v815_v8 = vmul.f32 %v3186_v26, %v2634_v58  ;;  %v3192_v59 = vunpack.c.l.bf16 %v3191_v53  ;;  %v3193_v23 = vunpack.c.h.bf16 %v3191_v53 }
 0x168   : > { %v3195_v56 = vunpack.c.l.bf16 %v3194_v6  ;;  %v3196_v29 = vunpack.c.h.bf16 %v3194_v6  ;;  %v774_v17 = vadd.f32 %v770_v60, %v753_v22  ;;  %v775_v14 = vadd.f32 %v771_v18, %v754_v0  ;;  %v3211_v22 = vld [vmem:[#allocation37_spill] sm:$0xff]  ;;  %v3215_v6 = vld [vmem:[#allocation19_spill] sm:$0xff] }
 0x169   : > { %v833_v49 = vmul.f32 %v3192_v59, %v3190_v35  ;;  %v834_v24 = vmul.f32 %v3193_v23, %v3190_v35  ;;  %v776_v13 = vadd.f32 %v772_v55, %v755_v12  ;;  %v777_v51 = vadd.f32 %v773_v15, %v756_v52  ;;  %v3212_v59 = vld [vmem:[#allocation18_spill] sm:$0xff] }
 0x16a   : > { %v835_v58 = vmul.f32 %v3195_v56, %v3190_v35  ;;  %v836_v28 = vmul.f32 %v3196_v29, %v3190_v35  ;;  %v3199_v27 = vunpack.c.l.bf16 %v3198_v62  ;;  %v3200_v48 = vunpack.c.h.bf16 %v3198_v62 }
 0x16b   : > { %v3202_v63 = vunpack.c.l.bf16 %v3201_v5  ;;  %v3203_v7 = vunpack.c.h.bf16 %v3201_v5  ;;  %v795_v60 = vadd.f32 %v791_v54, %v774_v17  ;;  %v796_v18 = vadd.f32 %v792_v10, %v775_v14  ;;  %v3218_v14 = vld [vmem:[#allocation20_spill] sm:$0xff] }
 0x16c   : > { %v854_v25 = vmul.f32 %v3199_v27, %v3197_v61  ;;  %v855_v57 = vmul.f32 %v3200_v48, %v3197_v61  ;;  %v797_v55 = vadd.f32 %v793_v4, %v776_v13  ;;  %v798_v15 = vadd.f32 %v794_v9, %v777_v51  ;;  %v3221_v27 = vld [vmem:[#allocation21_spill] sm:$0xff] }
 0x16d   : > { %v856_v41 = vmul.f32 %v3202_v63, %v3197_v61  ;;  %v857_v3 = vmul.f32 %v3203_v7, %v3197_v61  ;;  %v3206_v46 = vunpack.c.l.bf16 %v3205_v50  ;;  %v3207_v11 = vunpack.c.h.bf16 %v3205_v50  ;;  %v3227_v50 = vld [vmem:[#allocation23_spill] sm:$0xff] }
 0x16e   : > { %v3209_v45 = vunpack.c.l.bf16 %v3208_v47  ;;  %v3210_v43 = vunpack.c.h.bf16 %v3208_v47  ;;  %v816_v54 = vadd.f32 %v812_v36, %v795_v60  ;;  %v817_v10 = vadd.f32 %v813_v19, %v796_v18  ;;  %v3224_v60 = vld [vmem:[#allocation22_spill] sm:$0xff] }
 0x16f   : > { %v875_v30 = vmul.f32 %v3206_v46, %v3204_v42  ;;  %v876_v1 = vmul.f32 %v3207_v11, %v3204_v42  ;;  %v818_v4 = vadd.f32 %v814_v20, %v797_v55  ;;  %v819_v9 = vadd.f32 %v815_v8, %v798_v15 }
 0x170   : > { %v877_v2 = vmul.f32 %v3209_v45, %v3204_v42  ;;  %v878_v26 = vmul.f32 %v3210_v43, %v3204_v42  ;;  %v895_v16 = vrot.slane %v3211_v22, %v2227_v31  ;;  %v916_v0 = vrot.slane %v3211_v22, %v2230_v32 }
 0x171   : > { %v937_v44 = vrot.slane %v3211_v22, %v2233_v33  ;;  %v958_v12 = vrot.slane %v3211_v22, %v2236_v34  ;;  %v837_v21 = vadd.f32 %v833_v49, %v816_v54  ;;  %v838_v52 = vadd.f32 %v834_v24, %v817_v10 }
 0x172   : > { %v839_v35 = vadd.f32 %v835_v58, %v818_v4  ;;  %v840_v53 = vadd.f32 %v836_v28, %v819_v9  ;;  %v979_v36 = vrot.slane %v3211_v22, %v2245_v37  ;;  %v1000_v19 = vrot.slane %v3211_v22, %v2248_v38 }
 0x173   : > { %v1021_v31 = vrot.slane %v3211_v22, %v2251_v39  ;;  %v2878_v32 = vrot.slane %v3211_v22, %v2254_v40  ;;  %v858_v33 = vadd.f32 %v854_v25, %v837_v21  ;;  %v859_v20 = vadd.f32 %v855_v57, %v838_v52  ;;  %v3233_v22 = vld [vmem:[#allocation25_spill] sm:$0xff] }
 0x174   : > { %v860_v34 = vadd.f32 %v856_v41, %v839_v35  ;;  %v861_v8 = vadd.f32 %v857_v3, %v840_v53  ;;  %v3213_v49 = vunpack.c.l.bf16 %v3212_v59  ;;  %v3214_v24 = vunpack.c.h.bf16 %v3212_v59 }
 0x175   : > { %v3216_v56 = vunpack.c.l.bf16 %v3215_v6  ;;  %v3217_v58 = vunpack.c.h.bf16 %v3215_v6  ;;  %v879_v29 = vadd.f32 %v875_v30, %v858_v33  ;;  %v880_v28 = vadd.f32 %v876_v1, %v859_v20  ;;  %v3236_v20 = vld [vmem:[#allocation26_spill] sm:$0xff] }
 0x176   : > { %v896_v23 = vmul.f32 %v3213_v49, %v895_v16  ;;  %v897_v37 = vmul.f32 %v3214_v24, %v895_v16  ;;  %v881_v40 = vadd.f32 %v877_v2, %v860_v34  ;;  %v882_v17 = vadd.f32 %v878_v26, %v861_v8  ;;  %v3230_v26 = vld [vmem:[#allocation24_spill] sm:$0xff] }
 0x177   : > { %v898_v38 = vmul.f32 %v3216_v56, %v895_v16  ;;  %v899_v39 = vmul.f32 %v3217_v58, %v895_v16  ;;  %v3219_v13 = vunpack.c.l.bf16 %v3218_v14  ;;  %v3220_v61 = vunpack.c.h.bf16 %v3218_v14 }
 0x178   : > { %v3222_v25 = vunpack.c.l.bf16 %v3221_v27  ;;  %v3223_v57 = vunpack.c.h.bf16 %v3221_v27  ;;  %v900_v63 = vadd.f32 %v896_v23, %v879_v29  ;;  %v901_v41 = vadd.f32 %v897_v37, %v880_v28  ;;  %v3239_v23 = vld [vmem:[#allocation27_spill] sm:$0xff]  ;;  %v3242_v29 = vld [vmem:[#allocation28_spill] sm:$0xff] }
 0x179   : > { %v917_v51 = vmul.f32 %v3219_v13, %v916_v0  ;;  %v918_v62 = vmul.f32 %v3220_v61, %v916_v0  ;;  %v902_v7 = vadd.f32 %v898_v38, %v881_v40  ;;  %v903_v3 = vadd.f32 %v899_v39, %v882_v17  ;;  %v3245_v13 = vld [vmem:[#allocation29_spill] sm:$0xff] }
 0x17a   : > { %v919_v48 = vmul.f32 %v3222_v25, %v916_v0  ;;  %v920_v5 = vmul.f32 %v3223_v57, %v916_v0  ;;  %v3225_v18 = vunpack.c.l.bf16 %v3224_v60  ;;  %v3226_v15 = vunpack.c.h.bf16 %v3224_v60  ;;  %v3251_v60 = vld [vmem:[#allocation31_spill] sm:$0xff] }
 0x17b   : > { %v3228_v46 = vunpack.c.l.bf16 %v3227_v50  ;;  %v3229_v11 = vunpack.c.h.bf16 %v3227_v50  ;;  %v921_v47 = vadd.f32 %v917_v51, %v900_v63  ;;  %v922_v45 = vadd.f32 %v918_v62, %v901_v41 }
 0x17c   : > { %v938_v55 = vmul.f32 %v3225_v18, %v937_v44  ;;  %v939_v42 = vmul.f32 %v3226_v15, %v937_v44  ;;  %v923_v2 = vadd.f32 %v919_v48, %v902_v7  ;;  %v924_v43 = vadd.f32 %v920_v5, %v903_v3  ;;  %v3248_v5 = vld [vmem:[#allocation30_spill] sm:$0xff] }
 0x17d   : > { %v940_v30 = vmul.f32 %v3228_v46, %v937_v44  ;;  %v941_v1 = vmul.f32 %v3229_v11, %v937_v44  ;;  %v3231_v54 = vunpack.c.l.bf16 %v3230_v26  ;;  %v3232_v4 = vunpack.c.h.bf16 %v3230_v26  ;;  %v3254_v11 = vld [vmem:[#allocation32_spill] sm:$0xff] }
 0x17e   : > { %v3234_v16 = vunpack.c.l.bf16 %v3233_v22  ;;  %v3235_v21 = vunpack.c.h.bf16 %v3233_v22  ;;  %v942_v35 = vadd.f32 %v938_v55, %v921_v47  ;;  %v943_v53 = vadd.f32 %v939_v42, %v922_v45 }
 0x17f   : > { %v959_v10 = vmul.f32 %v3231_v54, %v958_v12  ;;  %v960_v9 = vmul.f32 %v3232_v4, %v958_v12  ;;  %v944_v33 = vadd.f32 %v940_v30, %v923_v2  ;;  %v945_v44 = vadd.f32 %v941_v1, %v924_v43  ;;  %v3257_v43 = vld [vmem:[#allocation33_spill] sm:$0xff] }
 0x180   : > { %v961_v0 = vmul.f32 %v3234_v16, %v958_v12  ;;  %v962_v52 = vmul.f32 %v3235_v21, %v958_v12  ;;  %v3237_v34 = vunpack.c.l.bf16 %v3236_v20  ;;  %v3238_v59 = vunpack.c.h.bf16 %v3236_v20 }
 0x181   : > { %v3240_v24 = vunpack.c.l.bf16 %v3239_v23  ;;  %v3241_v6 = vunpack.c.h.bf16 %v3239_v23  ;;  %v963_v38 = vadd.f32 %v959_v10, %v942_v35  ;;  %v964_v58 = vadd.f32 %v960_v9, %v943_v53 }
 0x182   : > { %v980_v8 = vmul.f32 %v3237_v34, %v979_v36  ;;  %v981_v49 = vmul.f32 %v3238_v59, %v979_v36  ;;  %v965_v39 = vadd.f32 %v961_v0, %v944_v33  ;;  %v966_v12 = vadd.f32 %v962_v52, %v945_v44 }
 0x183   : > { %v982_v37 = vmul.f32 %v3240_v24, %v979_v36  ;;  %v983_v56 = vmul.f32 %v3241_v6, %v979_v36  ;;  %v3243_v28 = vunpack.c.l.bf16 %v3242_v29  ;;  %v3244_v17 = vunpack.c.h.bf16 %v3242_v29 }
 0x184   : > { %v3246_v51 = vunpack.c.l.bf16 %v3245_v13  ;;  %v3247_v62 = vunpack.c.h.bf16 %v3245_v13  ;;  %v984_v25 = vadd.f32 %v980_v8, %v963_v38  ;;  %v985_v48 = vadd.f32 %v981_v49, %v964_v58 }
 0x185   : > { %v1001_v40 = vmul.f32 %v3243_v28, %v1000_v19  ;;  %v1002_v14 = vmul.f32 %v3244_v17, %v1000_v19  ;;  %v986_v57 = vadd.f32 %v982_v37, %v965_v39  ;;  %v987_v36 = vadd.f32 %v983_v56, %v966_v12 }
 0x186   : > { %v1003_v61 = vmul.f32 %v3246_v51, %v1000_v19  ;;  %v1004_v27 = vmul.f32 %v3247_v62, %v1000_v19  ;;  %v3249_v63 = vunpack.c.l.bf16 %v3248_v5  ;;  %v3250_v7 = vunpack.c.h.bf16 %v3248_v5 }
 0x187   : > { %v3252_v18 = vunpack.c.l.bf16 %v3251_v60  ;;  %v3253_v15 = vunpack.c.h.bf16 %v3251_v60  ;;  %v1005_v50 = vadd.f32 %v1001_v40, %v984_v25  ;;  %v1006_v46 = vadd.f32 %v1002_v14, %v985_v48 }
 0x188   : > { %v1022_v41 = vmul.f32 %v3249_v63, %v1021_v31  ;;  %v1023_v3 = vmul.f32 %v3250_v7, %v1021_v31  ;;  %v1007_v30 = vadd.f32 %v1003_v61, %v986_v57  ;;  %v1008_v19 = vadd.f32 %v1004_v27, %v987_v36 }
 0x189   : > { %v1024_v55 = vmul.f32 %v3252_v18, %v1021_v31  ;;  %v1025_v42 = vmul.f32 %v3253_v15, %v1021_v31  ;;  %v3255_v1 = vunpack.c.l.bf16 %v3254_v11  ;;  %v3256_v45 = vunpack.c.h.bf16 %v3254_v11 }
 0x18a   : > { %v3258_v26 = vunpack.c.l.bf16 %v3257_v43  ;;  %v3259_v10 = vunpack.c.h.bf16 %v3257_v43  ;;  %v1026_v4 = vadd.f32 %v1022_v41, %v1005_v50  ;;  %v1027_v9 = vadd.f32 %v1023_v3, %v1006_v46  ;;  %1053 = sbr.rel (%p1456_p7) target bundleno = 608 (0x260), region = 48 }
 0x18b   : > { %v1043_v47 = vmul.f32 %v3255_v1, %v2878_v32  ;;  %v1044_v2 = vmul.f32 %v3256_v45, %v2878_v32  ;;  %v1028_v22 = vadd.f32 %v1024_v55, %v1007_v30  ;;  %v1029_v16 = vadd.f32 %v1025_v42, %v1008_v19 }
 0x18c   : > { %v1045_v54 = vmul.f32 %v3258_v26, %v2878_v32  ;;  %v1046_v31 = vmul.f32 %v3259_v10, %v2878_v32 }
 0x18d   : > { %v1047_v0 = vadd.f32 %v1043_v47, %v1026_v4  ;;  %v1048_v21 = vadd.f32 %v1044_v2, %v1027_v9 }
 0x18e   : > { %v1049_v52 = vadd.f32 %v1045_v54, %v1028_v22  ;;  %v1050_v35 = vadd.f32 %v1046_v31, %v1029_v16 }
 0x18f   : > { %v3260_v53 = vld [vmem:[#allocation8_spill] sm:$0xff]  ;;  %v1054_v33 = vld [vmem:[%s2158_s30] sm:$0xff]  ;;  %vm1060_vm8 = vcmask 261120   ;;  %v1056_v20 = vld [vmem:[%s2158_s30 + $0x10] sm:$0xff] }
 0x190   : > { %1820 = vmatprep.subr.bf16.mxu0 %v3260_v53  ;;  %v1055_v44 = vld [vmem:[%s2158_s30 + $0x8] sm:$0xff]  ;;  %v1057_v34 = vld [vmem:[%s2158_s30 + $0x18] sm:$0xff]  ;;  %v3261_v8 = vld [vmem:[#allocation7_spill] sm:$0xff] }
 0x191   : > { %1821 = vmatpush3.bf16.msra.mxu0 %v3260_v53  ;;  %v1058_v32 = vpack.c.bf16 %v1055_v44, %v1054_v33  ;;  %v1059_v59 = vpack.c.bf16 %v1057_v34, %v1056_v20 }
 0x192   : > { %1822 = vmatprep.subr.bf16.mxu0 %v3261_v8 }
 0x193   : > { %1824 = vmatprep.mubr.msk.bf16.mxu0 %vm1060_vm8, %v1058_v32 }
 0x195   : > { %1823 = vmatpush3.bf16.msra.mxu0 %v3261_v8 }
 0x198   : > { %1825 = vmatmul.mubr.msk.bf16.vlgmr.msra.gmra.mxu0 %vm1060_vm8, %v1059_v59 }
 0x258   : > { %v1826_v49 = vpop.f32.mrf.mxu0 }
 0x259   : > { %1118 = vst [vmem:[#allocation2 + $0x18] sm:$0xff] %v1826_v49 }
 0x25a   : > { %v1101_v23 = vpop.f32.mrf.mxu0 }
 0x25b   : > { %1116 = vst [vmem:[#allocation2 + $0x10] sm:$0xff] %v1101_v23 }
 0x25c   : > { %v1827_v24 = vpop.f32.mrf.mxu0 }
 0x25d   : > { %1119 = vst [vmem:[#allocation2 + $0x8] sm:$0xff] %v1827_v24 }
 0x25e   : > { %v1104_v37 = vpop.f32.mrf.mxu0 }
 0x25f   : > { %1117 = vst [vmem:[#allocation2] sm:$0xff] %v1104_v37 }
 0x260 PF: > { %v1122_v38 = vld [vmem:[#allocation2 + $0x18] sm:$0xff]  ;;  %p1459_p0 = scmp.ne.s32.totalorder %s1999_s18, 4 }
 0x261   : > { %v1126_v12 = vadd.f32 %v1122_v38, %v1049_v52 }
 0x262   : > { %v1120_v6 = vld [vmem:[#allocation2 + $0x10] sm:$0xff] }
 0x263   : > { %v1124_v58 = vadd.f32 %v1120_v6, %v1047_v0  ;;  %1130 = vst [vmem:[#allocation2 + $0x18] sm:$0xff] %v1126_v12 }
 0x264   : > { %v1123_v29 = vld [vmem:[#allocation2 + $0x8] sm:$0xff] }
 0x265   : > { %v1127_v28 = vadd.f32 %v1123_v29, %v1050_v35  ;;  %1128 = vst [vmem:[#allocation2 + $0x10] sm:$0xff] %v1124_v58  ;;  %1135 = sbr.rel (%p1459_p0) target bundleno = 775 (0x307), region = 52 }
 0x266   : > { %v1121_v56 = vld [vmem:[#allocation2] sm:$0xff] }
 0x267   : > { %v1125_v39 = vadd.f32 %v1121_v56, %v1048_v21  ;;  %1131 = vst [vmem:[#allocation2 + $0x8] sm:$0xff] %v1127_v28 }
 0x269   : > { %1129 = vst [vmem:[#allocation2] sm:$0xff] %v1125_v39 }
 0x26a   : > { %v1138_v40 = vld [vmem:[%s2158_s30 + $0x10] sm:$0xff]  ;;  %v1136_v17 = vld [vmem:[%s2158_s30] sm:$0xff]  ;;  %v2022_v14 = vmov 32   ;;  %v1139_v13 = vld [vmem:[%s2158_s30 + $0x18] sm:$0xff]  ;;  %v2023_v61 = vmov 33   ;;  %v2024_v62 = vmov 34  }
 0x26b   : > { %1908 = vset.pattern.permute.xlu1 %v2022_v14  ;;  %1907 = vset.pattern.permute.xlu0 %v2022_v14  ;;  %v1137_v51 = vld [vmem:[%s2158_s30 + $0x8] sm:$0xff]  ;;  %v1142_v27 = vld [vmem:[#allocation2 + $0x18] sm:$0xff] }
 0x26c   : > { %1156 = vperm.xlu1 %1908, %v1138_v40   ;;  %1146 = vperm.xlu0 %1907, %v1136_v17   ;;  %v1140_v25 = vld [vmem:[#allocation2 + $0x10] sm:$0xff] }
 0x26e   : > { %v1143_v63 = vld [vmem:[#allocation2 + $0x8] sm:$0xff] }
 0x270   : > { %1161 = vperm.xlu1 %1908, %v1139_v13   ;;  %1151 = vperm.xlu0 %1907, %v1137_v51   ;;  %v1141_v41 = vld [vmem:[#allocation2] sm:$0xff] }
 0x274   : > { %1910 = vset.pattern.permute.xlu1 %v2023_v61  ;;  %1909 = vset.pattern.permute.xlu0 %v2023_v61 }
 0x275   : > { %1193 = vperm.xlu1 %1910, %v1137_v51   ;;  %1189 = vperm.xlu0 %1909, %v1136_v17  }
 0x279   : > { %1197 = vperm.xlu1 %1910, %v1138_v40   ;;  %1201 = vperm.xlu0 %1909, %v1139_v13  }
 0x27d   : > { %1911 = vset.pattern.permute.xlu1 %v2024_v62  ;;  %1912 = vset.pattern.permute.xlu0 %v2024_v62 }
 0x27e   : > { %1209 = vperm.xlu1 %1911, %v1136_v17   ;;  %1213 = vperm.xlu0 %1912, %v1137_v51  }
 0x282   : > { %1217 = vperm.xlu1 %1911, %v1138_v40  }
 0x286   : > { %1221 = vperm.xlu1 %1911, %v1139_v13  }
 0x2e7   : > { %v1157_v48 = vpop.permute.xlu1 %1156  ;;  %v1147_v57 = vpop.permute.xlu0 %1146 }
 0x2e8   : > { %v1166_v36 = vadd.f32 %v1157_v48, %v1142_v27  ;;  %v1164_v5 = vadd.f32 %v1147_v57, %v1140_v25 }
 0x2ea   : > { %v1176_v7 = vmul.f32 1.442695, %v1166_v36  ;;  %v1172_v3 = vmul.f32 1.442695, %v1164_v5  ;;  %vm1170_vm9 = vcmp.gt.f32.partialorder %v1166_v36, 0.0  ;;  %vm1168_vm10 = vcmp.gt.f32.partialorder %v1164_v5, 0.0 }
 0x2eb   : > { %v1162_v60 = vpop.permute.xlu1 %1161  ;;  %v1152_v18 = vpop.permute.xlu0 %1151 }
 0x2ec   : > { %1913 = vpow2.f32 %v1176_v7  ;;  %v1167_v55 = vadd.f32 %v1162_v60, %v1143_v63  ;;  %v1165_v15 = vadd.f32 %v1152_v18, %v1141_v41 }
 0x2ed   : > { %1915 = vpow2.f32 %v1172_v3 }
 0x2ee   : > { %v1178_v42 = vmul.f32 1.442695, %v1167_v55  ;;  %v1174_v50 = vmul.f32 1.442695, %v1165_v15  ;;  %vm1171_vm11 = vcmp.gt.f32.partialorder %v1167_v55, 0.0  ;;  %vm1169_vm12 = vcmp.gt.f32.partialorder %v1165_v15, 0.0 }
 0x2f0   : > { %1917 = vpow2.f32 %v1178_v42  ;;  %v1194_v46 = vpop.permute.xlu1 %1193  ;;  %v1190_v19 = vpop.permute.xlu0 %1189 }
 0x2f1   : > { %1919 = vpow2.f32 %v1174_v50 }
 0x2f4   : > { %v1198_v30 = vpop.permute.xlu1 %1197  ;;  %v1202_v31 = vpop.permute.xlu0 %1201 }
 0x2f9   : > { %v1914_v11 = vpop.eup %1913  ;;  %v1210_v1 = vpop.permute.xlu1 %1209 }
 0x2fa   : > { %v1916_v47 = vpop.eup %1915  ;;  %v1462_v45 = vadd.f32 -1.0, %v1914_v11  ;;  %v1214_v32 = vpop.permute.xlu0 %1213 }
 0x2fb   : > { %v1460_v2 = vadd.f32 -1.0, %v1916_v47 }
 0x2fc   : > { %v1186_v43 = vsel %vm1170_vm9, %v1166_v36, %v1462_v45 }
 0x2fd   : > { %v1918_v26 = vpop.eup %1917  ;;  %v1206_v54 = vmul.f32 %v1198_v30, %v1186_v43  ;;  %v1184_v10 = vsel %vm1168_vm10, %v1164_v5, %v1460_v2  ;;  %v1218_v4 = vpop.permute.xlu1 %1217 }
 0x2fe   : > { %v1920_v9 = vpop.eup %1919  ;;  %v1204_v22 = vmul.f32 %v1190_v19, %v1184_v10  ;;  %v1463_v16 = vadd.f32 -1.0, %v1918_v26 }
 0x2ff   : > { %v1461_v0 = vadd.f32 -1.0, %v1920_v9  ;;  %v1226_v21 = vadd.f32 %v1218_v4, %v1206_v54 }
 0x300   : > { %v1224_v52 = vadd.f32 %v1210_v1, %v1204_v22  ;;  %v1187_v35 = vsel %vm1171_vm11, %v1167_v55, %v1463_v16 }
 0x301   : > { %v1185_v53 = vsel %vm1169_vm12, %v1165_v15, %v1461_v0  ;;  %v1207_v33 = vmul.f32 %v1202_v31, %v1187_v35  ;;  %1230 = vst [vmem:[%s3002_s4 + $0x10] sm:$0xff] %v1226_v21  ;;  %v1222_v44 = vpop.permute.xlu1 %1221 }
 0x302   : > { %v1205_v20 = vmul.f32 %v1194_v46, %v1185_v53  ;;  %1228 = vst [vmem:[%s3002_s4] sm:$0xff] %v1224_v52 }
 0x303   : > { %v1227_v34 = vadd.f32 %v1222_v44, %v1207_v33 }
 0x304   : > { %v1225_v8 = vadd.f32 %v1214_v32, %v1205_v20 }
 0x305   : > { %1231 = vst [vmem:[%s3002_s4 + $0x18] sm:$0xff] %v1227_v34 }
 0x306   : > { %1229 = vst [vmem:[%s3002_s4 + $0x8] sm:$0xff] %v1225_v8 }
 0x307 PF: > { %s17_s22 = sadd.s32 1, %s2015_s22   ;;  %s3262_s29 = sld [smem:[#allocation6_spill]] }
 0x308   : > { %p14_p1 = scmp.ge.s32.totalorder %s17_s22, 62   ;;  %s3263_s15 = smov %s1991_s16 }
 0x309   : > { %s3264_s16 = smov %s1995_s17  ;;  %s3265_s17 = smov %s2117_s9 }
 0x30a   : > { %s3266_s18 = smov %s2007_s20  ;;  %s3267_s19 = smov %s2011_s21 }
 0x30b   : > { %s3268_s20 = smov %s3271_s24  ;;  %16 = sbr.rel (!%p14_p1) target bundleno = 5 (0x5), region = 121 }
 0x30d   : > { %s3269_s21 = smov %s3262_s29 }
 0x310   :  { %1243 = vsyncpa [#allocation4], 1 }
 0x311   :  { %1245 = vsyncpa [#allocation4 + $0x1], 1 }

</bundles_post_ra>
